<compile_context>
chip_gen: v7x
topology: tpu7x:2x2x1
jax: 0.10.0
libtpu: 0.0.40
codegen_flags: <defaults>
</compile_context>

<pallas_src>
import functools

import jax
import jax.numpy as jnp
from jax import lax
from jax.experimental import pallas as pl
from jax.experimental.pallas import tpu as pltpu


def _sigmoid(x):
    # sigmoid(x) = 0.5 * tanh(0.5 * x) + 0.5  -> single EUP tanh + VPU mul/add,
    # no exp overflow at the tails, stays in f32.
    return 0.5 * jnp.tanh(0.5 * x) + 0.5


def _mlp_kernel(x_ref, w0_ref, b0_ref, w1_ref, b1_ref, o_ref):
    # x : (TB, D) f32   input tile in natural (batch, feature) layout
    # w0: (H, D)  f32   PyTorch linear0.weight layout [out, in]
    # b0: (1, H)  f32
    # w1: (1, H)  f32   PyTorch linear1.weight layout
    # b1: (1, 1)  f32   SMEM scalar
    # o : (1, TB) f32   lane-dense output tile (batch on lanes)

    # Layer 0: x @ w0^T -> (TB, H); contraction over D on the MXU (NT form).
    h = lax.dot_general(
        x_ref[...], w0_ref[...], (((1,), (1,)), ((), ())),
        preferred_element_type=jnp.float32)
    h = _sigmoid(h + b0_ref[...])                       # (TB, H), f32

    # Layer 1: w1 @ h^T -> (1, TB); keeps the output lane-dense over batch.
    y = lax.dot_general(
        w1_ref[...], h, (((1,), (1,)), ((), ())),
        preferred_element_type=jnp.float32)
    o_ref[...] = _sigmoid(y + b1_ref[0, 0])


def _round_up(n, m):
    return ((n + m - 1) // m) * m


@functools.partial(jax.jit, static_argnames=("block_b",))
def nn_pt_2_forward(x, w0, b0, w1, b1, *, block_b=4096):
    """Forward pass of NN_PT_2 (PW=False).

    x : (B, D) f32;  w0: (H, D) f32 (PyTorch [out, in]);  b0: (H,) f32
    w1: (1, H) f32;  b1: (1,) f32.   Returns (B, 1) f32.
    """
    B, D = x.shape
    H = w0.shape[0]

    if B <= block_b:
        # Single grid step: block shapes equal the full array dims, so no
        # padding and no wrapper pass over x at all.
        tb, b_pad, grid = B, B, (1,)
        semantics = ("arbitrary",)
    else:
        # Large-batch path: lane-tile the batch (multiple of 128) and let v7x
        # shard the steps across its two TensorCores.
        tb = _round_up(min(block_b, B), 128)
        b_pad = _round_up(B, tb)
        grid = (b_pad // tb,)
        semantics = ("parallel",)

    x_in = x if b_pad == B else jnp.pad(x, ((0, b_pad - B), (0, 0)))
    b0c = b0.reshape(1, H).astype(jnp.float32)
    w1c = w1.reshape(1, H).astype(jnp.float32)
    b1s = jnp.reshape(b1, (1, 1)).astype(jnp.float32)

    out = pl.pallas_call(
        _mlp_kernel,
        out_shape=jax.ShapeDtypeStruct((1, b_pad), jnp.float32),
        grid=grid,
        in_specs=[
            pl.BlockSpec((tb, D), lambda i: (i, 0)),            # x tile, natural layout
            pl.BlockSpec((H, D), lambda i: (0, 0)),             # resident weights
            pl.BlockSpec((1, H), lambda i: (0, 0)),             # resident b0
            pl.BlockSpec((1, H), lambda i: (0, 0)),             # resident w1
            pl.BlockSpec(memory_space=pltpu.MemorySpace.SMEM),  # b1 scalar
        ],
        out_specs=pl.BlockSpec((1, tb), lambda i: (0, i)),      # lane-dense output
        compiler_params=pltpu.CompilerParams(
            dimension_semantics=semantics,
        ),
    )(x_in, w0, b0c, w1c, b1s)

    return out[:, :B].reshape(B, 1)


def _reference(x, w0, b0, w1, b1):
    h = jax.nn.sigmoid(x @ w0.T + b0)
    return jax.nn.sigmoid(h @ w1.T + b1)


if __name__ == "__main__":
    # Non-multiple-of-128 batch exercises the no-padding single-step path;
    # the second call (block_b=256) exercises the padded multi-step path.
    batch, input_dim, hidden_dim = 1000, 32, 10

    key = jax.random.PRNGKey(0)
    kx, k0w, k0b, k1w, k1b = jax.random.split(key, 5)

    x = jax.random.normal(kx, (batch, input_dim), dtype=jnp.float32)

    # torch.nn.Linear-style init (uniform +/- 1/sqrt(fan_in)), PyTorch [out, in] layout.
    bound0 = 1.0 / (input_dim ** 0.5)
    w0 = jax.random.uniform(k0w, (hidden_dim, input_dim), jnp.float32, -bound0, bound0)
    b0 = jax.random.uniform(k0b, (hidden_dim,), jnp.float32, -bound0, bound0)
    bound1 = 1.0 / (hidden_dim ** 0.5)
    w1 = jax.random.uniform(k1w, (1, hidden_dim), jnp.float32, -bound1, bound1)
    b1 = jax.random.uniform(k1b, (1,), jnp.float32, -bound1, bound1)

    ref = _reference(x, w0, b0, w1, b1)

    # Single-step path (grid=(1,), no padding).
    out = jax.block_until_ready(nn_pt_2_forward(x, w0, b0, w1, b1))
    assert out.shape == (batch, 1)
    err = float(jnp.max(jnp.abs(out - ref)))
    assert err < 1e-4, f"single-step max abs error {err}"

    # Multi-step path (grid over batch, padded to a multiple of the lane tile).
    out_tiled = jax.block_until_ready(nn_pt_2_forward(x, w0, b0, w1, b1, block_b=256))
    assert out_tiled.shape == (batch, 1)
    err_tiled = float(jnp.max(jnp.abs(out_tiled - ref)))
    assert err_tiled < 1e-4, f"multi-step max abs error {err_tiled}"

    print("KERNEL_OK")
</pallas_src>

<mosaic_0001>
module attributes {stable_mosaic.version = 11 : i64} {
  func.func @_mlp_kernel(%arg0: i32, %arg1: memref<1000x32xf32, #tpu.memory_space<vmem>>, %arg2: memref<10x32xf32, #tpu.memory_space<vmem>>, %arg3: memref<1x10xf32, #tpu.memory_space<vmem>>, %arg4: memref<1x10xf32, #tpu.memory_space<vmem>>, %arg5: memref<1x1xf32, #tpu.memory_space<smem>>, %arg6: memref<1x1000xf32, #tpu.memory_space<vmem>>) attributes {dimension_semantics = [#tpu.dimension_semantics<arbitrary>], iteration_bounds = array<i64: 1>, scalar_prefetch = 0 : i64, scratch_operands = 0 : i64, tpu.core_type = #tpu.core_type<tc>, window_params = [{transform_indices = @transform_0, window_bounds = array<i64: 1000, 32>}, {pipeline_mode = #tpu.pipeline_mode<synchronous>, transform_indices = @transform_1, window_bounds = array<i64: 10, 32>}, {pipeline_mode = #tpu.pipeline_mode<synchronous>, transform_indices = @transform_2, window_bounds = array<i64: 1, 10>}, {pipeline_mode = #tpu.pipeline_mode<synchronous>, transform_indices = @transform_3, window_bounds = array<i64: 1, 10>}, {transform_indices = @transform_4, window_bounds = array<i64: 1, 1>}, {transform_indices = @transform_5, window_bounds = array<i64: 1, 1000>}]} {
    %c0 = arith.constant 0 : index
    %c0_0 = arith.constant 0 : index
    %0 = vector.load %arg1[%c0, %c0_0] : memref<1000x32xf32, #tpu.memory_space<vmem>>, vector<1000x32xf32>
    %c0_1 = arith.constant 0 : index
    %c0_2 = arith.constant 0 : index
    %1 = vector.load %arg2[%c0_1, %c0_2] : memref<10x32xf32, #tpu.memory_space<vmem>>, vector<10x32xf32>
    %cst = arith.constant dense<0.000000e+00> : vector<1000x10xf32>
    %2 = tpu.matmul %0, %1, %cst {dimension_numbers = #tpu.dot_dimension_numbers<[1], [1], [0], [0], [0, 0, 1, 0], [], []>} : vector<1000x32xf32>, vector<10x32xf32>, vector<1000x10xf32> -> vector<1000x10xf32>
    %c0_3 = arith.constant 0 : index
    %c0_4 = arith.constant 0 : index
    %3 = vector.load %arg3[%c0_3, %c0_4] : memref<1x10xf32, #tpu.memory_space<vmem>>, vector<1x10xf32>
    %4 = vector.broadcast %3 : vector<1x10xf32> to vector<1000x10xf32>
    %5 = arith.addf %2, %4 : vector<1000x10xf32>
    %cst_5 = arith.constant 5.000000e-01 : f32
    %6 = vector.broadcast %cst_5 : f32 to vector<1000x10xf32>
    %7 = arith.mulf %6, %5 : vector<1000x10xf32>
    %8 = math.tanh %7 : vector<1000x10xf32>
    %cst_6 = arith.constant 5.000000e-01 : f32
    %9 = vector.broadcast %cst_6 : f32 to vector<1000x10xf32>
    %10 = arith.mulf %9, %8 : vector<1000x10xf32>
    %cst_7 = arith.constant 5.000000e-01 : f32
    %11 = vector.broadcast %cst_7 : f32 to vector<1000x10xf32>
    %12 = arith.addf %10, %11 : vector<1000x10xf32>
    %c0_8 = arith.constant 0 : index
    %c0_9 = arith.constant 0 : index
    %13 = vector.load %arg4[%c0_8, %c0_9] : memref<1x10xf32, #tpu.memory_space<vmem>>, vector<1x10xf32>
    %cst_10 = arith.constant dense<0.000000e+00> : vector<1x1000xf32>
    %14 = tpu.matmul %13, %12, %cst_10 {dimension_numbers = #tpu.dot_dimension_numbers<[1], [1], [0], [0], [0, 0, 1, 0], [], []>} : vector<1x10xf32>, vector<1000x10xf32>, vector<1x1000xf32> -> vector<1x1000xf32>
    %c0_11 = arith.constant 0 : index
    %c0_12 = arith.constant 0 : index
    %15 = memref.load %arg5[%c0_11, %c0_12] : memref<1x1xf32, #tpu.memory_space<smem>>
    %16 = vector.broadcast %15 : f32 to vector<1x1000xf32>
    %17 = arith.addf %14, %16 : vector<1x1000xf32>
    %cst_13 = arith.constant 5.000000e-01 : f32
    %18 = vector.broadcast %cst_13 : f32 to vector<1x1000xf32>
    %19 = arith.mulf %18, %17 : vector<1x1000xf32>
    %20 = math.tanh %19 : vector<1x1000xf32>
    %cst_14 = arith.constant 5.000000e-01 : f32
    %21 = vector.broadcast %cst_14 : f32 to vector<1x1000xf32>
    %22 = arith.mulf %21, %20 : vector<1x1000xf32>
    %cst_15 = arith.constant 5.000000e-01 : f32
    %23 = vector.broadcast %cst_15 : f32 to vector<1x1000xf32>
    %24 = arith.addf %22, %23 : vector<1x1000xf32>
    %c0_16 = arith.constant 0 : index
    %c0_17 = arith.constant 0 : index
    %25 = vector.load %arg6[%c0_16, %c0_17] : memref<1x1000xf32, #tpu.memory_space<vmem>>, vector<1x1000xf32>
    tpu.vector_store %arg6[%c0_16, %c0_17], %24 {strides = array<i32>} : memref<1x1000xf32, #tpu.memory_space<vmem>>, vector<1x1000xf32>,
    return
  }
  func.func @transform_0(%arg0: i32) -> (i32, i32) {
    %c0_i32 = arith.constant 0 : i32
    %c0_i32_0 = arith.constant 0 : i32
    return %arg0, %c0_i32 : i32, i32
  }
  func.func @transform_1(%arg0: i32) -> (i32, i32) {
    %c0_i32 = arith.constant 0 : i32
    %c0_i32_0 = arith.constant 0 : i32
    %c0_i32_1 = arith.constant 0 : i32
    return %c0_i32, %c0_i32_0 : i32, i32
  }
  func.func @transform_2(%arg0: i32) -> (i32, i32) {
    %c0_i32 = arith.constant 0 : i32
    %c0_i32_0 = arith.constant 0 : i32
    %c0_i32_1 = arith.constant 0 : i32
    return %c0_i32, %c0_i32_0 : i32, i32
  }
  func.func @transform_3(%arg0: i32) -> (i32, i32) {
    %c0_i32 = arith.constant 0 : i32
    %c0_i32_0 = arith.constant 0 : i32
    %c0_i32_1 = arith.constant 0 : i32
    return %c0_i32, %c0_i32_0 : i32, i32
  }
  func.func @transform_4(%arg0: i32) -> (i32, i32) {
    %c0_i32 = arith.constant 0 : i32
    %c0_i32_0 = arith.constant 0 : i32
    %c0_i32_1 = arith.constant 0 : i32
    return %c0_i32, %c0_i32_0 : i32, i32
  }
  func.func @transform_5(%arg0: i32) -> (i32, i32) {
    %c0_i32 = arith.constant 0 : i32
    %c0_i32_0 = arith.constant 0 : i32
    return %c0_i32, %arg0 : i32, i32
  }
}

</mosaic_0001>

<bundles_post_ra>
// kernel: nn_pt_2_forward.1
= control target key start
LH: loop header
LB: loop body
LE: loop exit
PB: predicated region body
PF: predicated region fallthrough
CT: control target
= control target key end

     0   :  { %vm156_vm0 = vcmask 261120   ;;  %v5374_v2 = vmov 0.0|0.0   ;;  %vm3873_vm2 = vmmov 0   ;;  %v5372_v4 = vmov 0.0   ;;  %s5366_s0 = inlined_call_operand.vmem [shape: f32[1000,32], index: 0, kind: input, shape index: {}]   ;;  %s5367_s1 = inlined_call_operand.vmem [shape: f32[10,32], index: 1, kind: input, shape index: {}]   ;;  %s5368_s2 = inlined_call_operand.vmem [shape: f32[1,10], index: 2, kind: input, shape index: {}]   ;;  %s5369_s3 = inlined_call_operand.vmem [shape: f32[1,10], index: 3, kind: input, shape index: {}]   ;;  %s5370_s4 = inlined_call_operand.<no memory space> [shape: f32[1,1], index: 4, kind: input, shape index: {}]   ;;  %s5371_s5 = inlined_call_operand.hbm [shape: f32[1,1000], index: 5, kind: output, shape index: {}]  }
   0x1   :  { %v147_v0 = vld [vmem:[%s5367_s1] sm:$0xff]  ;;  %v148_v1 = vld [vmem:[%s5367_s1 + $0x8] sm:$0x3]  ;;  %3368 = vmatprep.subr.bf16.mxu0 %v5374_v2  ;;  %vm3370_vm1 = vmpackc.low %vm156_vm0, %vm156_vm0  ;;  %3572 = vmatprep.subr.bf16.mxu1 %v5374_v2 }
   0x2   :  { %v3369_v3 = vpack.c.bf16 %v148_v1, %v147_v0  ;;  %2993 = vmatprep.mubr.msk.f32.mxu0 %vm3873_vm2, %v5372_v4  ;;  %3275 = vmatprep.mubr.msk.f32.mxu1 %vm3873_vm2, %v5372_v4  ;;  %v22_v5 = vld [vmem:[%s5366_s0] sm:$0xff]  ;;  %v23_v6 = vld [vmem:[%s5366_s0 + $0x8] sm:$0xff] }
   0x4   :  { %3371 = vmatpush3.bf16.xpose.msk.msra.mxu0 %vm3370_vm1, %v3369_v3  ;;  %3573 = vmatpush3.bf16.xpose.msk.msra.mxu1 %vm3370_vm1, %v3369_v3 }
   0xb   :  { %2994 = vmatmul.mubr.msk.f32.vlgmr.msra.gmra.mrb[0].mxu0 %vm156_vm0, %v22_v5 }
   0xc   :  { %2996 = vmatprep.mubr.msk.f32.mxu0 %vm3873_vm2, %v5372_v4 }
   0xd   :  { %11 = vsyncpa [#allocation4], 0  ;;  %v24_v7 = vld [vmem:[%s5366_s0 + $0x10] sm:$0xff]  ;;  %v25_v8 = vld [vmem:[%s5366_s0 + $0x18] sm:$0xff]  ;;  %vm1731_vm3 = vcmask 80896  }
   0xe   :  { %v26_v9 = vld [vmem:[%s5366_s0 + $0x20] sm:$0xff]  ;;  %v27_v10 = vld [vmem:[%s5366_s0 + $0x28] sm:$0xff]  ;;  %v28_v11 = vld [vmem:[%s5366_s0 + $0x30] sm:$0xff] }
   0xf   :  { %2997 = vmatmul.mubr.msk.f32.gmra.mrb[2].mxu0 %vm156_vm0, %v23_v6  ;;  %v29_v12 = vld [vmem:[%s5366_s0 + $0x38] sm:$0xff]  ;;  %v30_v13 = vld [vmem:[%s5366_s0 + $0x40] sm:$0xff]  ;;  %v31_v14 = vld [vmem:[%s5366_s0 + $0x48] sm:$0xff] }
  0x10   :  { %2999 = vmatprep.mubr.msk.f32.mxu0 %vm3873_vm2, %v5372_v4  ;;  %v32_v15 = vld [vmem:[%s5366_s0 + $0x50] sm:$0xff]  ;;  %v33_v16 = vld [vmem:[%s5366_s0 + $0x58] sm:$0xff]  ;;  %v34_v17 = vld [vmem:[%s5366_s0 + $0x60] sm:$0xff] }
  0x11   :  { %v35_v18 = vld [vmem:[%s5366_s0 + $0x68] sm:$0xff]  ;;  %v36_v19 = vld [vmem:[%s5366_s0 + $0x70] sm:$0xff]  ;;  %v37_v20 = vld [vmem:[%s5366_s0 + $0x78] sm:$0xff] }
  0x12   :  { %v38_v21 = vld [vmem:[%s5366_s0 + $0x80] sm:$0xff]  ;;  %v39_v22 = vld [vmem:[%s5366_s0 + $0x88] sm:$0xff]  ;;  %v40_v23 = vld [vmem:[%s5366_s0 + $0x90] sm:$0xff] }
  0x13   :  { %3000 = vmatmul.mubr.msk.f32.gmra.mrb[4].mxu0 %vm156_vm0, %v24_v7  ;;  %v41_v24 = vld [vmem:[%s5366_s0 + $0x98] sm:$0xff]  ;;  %v42_v25 = vld [vmem:[%s5366_s0 + $0xa0] sm:$0xff]  ;;  %v43_v26 = vld [vmem:[%s5366_s0 + $0xa8] sm:$0xff] }
  0x14   :  { %3002 = vmatprep.mubr.msk.f32.mxu0 %vm3873_vm2, %v5372_v4  ;;  %v44_v27 = vld [vmem:[%s5366_s0 + $0xb0] sm:$0xff]  ;;  %v45_v28 = vld [vmem:[%s5366_s0 + $0xb8] sm:$0xff]  ;;  %v46_v29 = vld [vmem:[%s5366_s0 + $0xc0] sm:$0xff] }
  0x15   :  { %v47_v30 = vld [vmem:[%s5366_s0 + $0xc8] sm:$0xff]  ;;  %v48_v31 = vld [vmem:[%s5366_s0 + $0xd0] sm:$0xff]  ;;  %v49_v32 = vld [vmem:[%s5366_s0 + $0xd8] sm:$0xff] }
  0x16   :  { %v50_v33 = vld [vmem:[%s5366_s0 + $0xe0] sm:$0xff]  ;;  %v51_v34 = vld [vmem:[%s5366_s0 + $0xe8] sm:$0xff]  ;;  %v52_v35 = vld [vmem:[%s5366_s0 + $0xf0] sm:$0xff] }
  0x17   :  { %3003 = vmatmul.mubr.msk.f32.gmra.mrb[6].mxu0 %vm156_vm0, %v25_v8  ;;  %v53_v36 = vld [vmem:[%s5366_s0 + $0xf8] sm:$0xff]  ;;  %v54_v37 = vld [vmem:[%s5366_s0 + $0x100] sm:$0xff]  ;;  %v55_v38 = vld [vmem:[%s5366_s0 + $0x108] sm:$0xff] }
  0x18   :  { %3005 = vmatprep.mubr.msk.f32.mxu0 %vm3873_vm2, %v5372_v4  ;;  %v56_v39 = vld [vmem:[%s5366_s0 + $0x110] sm:$0xff]  ;;  %v57_v40 = vld [vmem:[%s5366_s0 + $0x118] sm:$0xff]  ;;  %v58_v41 = vld [vmem:[%s5366_s0 + $0x120] sm:$0xff] }
  0x19   :  { %v59_v42 = vld [vmem:[%s5366_s0 + $0x128] sm:$0xff]  ;;  %v60_v43 = vld [vmem:[%s5366_s0 + $0x130] sm:$0xff]  ;;  %v61_v44 = vld [vmem:[%s5366_s0 + $0x138] sm:$0xff] }
  0x1a   :  { %v62_v45 = vld [vmem:[%s5366_s0 + $0x140] sm:$0xff]  ;;  %v63_v46 = vld [vmem:[%s5366_s0 + $0x148] sm:$0xff]  ;;  %v64_v47 = vld [vmem:[%s5366_s0 + $0x150] sm:$0xff] }
  0x1b   :  { %3006 = vmatmul.mubr.msk.f32.gmra.mrb[8].mxu0 %vm156_vm0, %v26_v9  ;;  %v65_v48 = vld [vmem:[%s5366_s0 + $0x158] sm:$0xff]  ;;  %v66_v49 = vld [vmem:[%s5366_s0 + $0x160] sm:$0xff]  ;;  %v116_v50 = vld [vmem:[%s5366_s0 + $0x2f0] sm:$0xff] }
  0x1c   :  { %3008 = vmatprep.mubr.msk.f32.mxu0 %vm3873_vm2, %v5372_v4  ;;  %3276 = vmatmul.mubr.msk.f32.vlgmr.msra.gmra.mrb[0].mxu1 %vm156_vm0, %v116_v50  ;;  %v67_v51 = vld [vmem:[%s5366_s0 + $0x168] sm:$0xff]  ;;  %v68_v52 = vld [vmem:[%s5366_s0 + $0x170] sm:$0xff]  ;;  %v117_v53 = vld [vmem:[%s5366_s0 + $0x2f8] sm:$0xff] }
  0x1d   :  { %3278 = vmatprep.mubr.msk.f32.mxu1 %vm3873_vm2, %v5372_v4  ;;  %v69_v54 = vld [vmem:[%s5366_s0 + $0x178] sm:$0xff]  ;;  %v118_v55 = vld [vmem:[%s5366_s0 + $0x300] sm:$0xff]  ;;  %v119_v57 = vld [vmem:[%s5366_s0 + $0x308] sm:$0xff] }
  0x1e   :  { %v70_v56 = vld [vmem:[%s5366_s0 + $0x180] sm:$0xff]  ;;  %v71_v58 = vld [vmem:[%s5366_s0 + $0x188] sm:$0xff]  ;;  %v120_v59 = vld [vmem:[%s5366_s0 + $0x310] sm:$0xff] }
  0x1f   :  { %3009 = vmatmul.mubr.msk.f32.gmra.mrb[10].mxu0 %vm156_vm0, %v27_v10  ;;  %v72_v60 = vld [vmem:[%s5366_s0 + $0x190] sm:$0xff]  ;;  %v121_v61 = vld [vmem:[%s5366_s0 + $0x318] sm:$0xff]  ;;  %v122_v63 = vld [vmem:[%s5366_s0 + $0x320] sm:$0xff] }
  0x20   :  { %3011 = vmatprep.mubr.msk.f32.mxu0 %vm3873_vm2, %v5372_v4  ;;  %3279 = vmatmul.mubr.msk.f32.gmra.mrb[2].mxu1 %vm156_vm0, %v117_v53  ;;  %v73_v62 = vld [vmem:[%s5366_s0 + $0x198] sm:$0xff]  ;;  %v74_v0 = vld [vmem:[%s5366_s0 + $0x1a0] sm:$0xff]  ;;  %v123_v1 = vld [vmem:[%s5366_s0 + $0x328] sm:$0xff] }
  0x21   :  { %3281 = vmatprep.mubr.msk.f32.mxu1 %vm3873_vm2, %v5372_v4  ;;  %v4288_v3 = vld [vmem:[%s5368_s2] ss:$0 sm:$0xff]  ;;  %v75_v5 = vld [vmem:[%s5366_s0 + $0x1a8] sm:$0xff]  ;;  %v124_v6 = vld [vmem:[%s5366_s0 + $0x330] sm:$0xff] }
  0x22   :  { %v76_v10 = vld [vmem:[%s5366_s0 + $0x1b0] sm:$0xff]  ;;  %vm4634_vm4 = vmpackc.low %vm1731_vm3, %vm1731_vm3 }
  0x23   :  { %3012 = vmatmul.mubr.msk.f32.gmra.mrb[12].mxu0 %vm156_vm0, %v28_v11  ;;  %v125_v11 = vld [vmem:[%s5366_s0 + $0x338] sm:$0xff] }
  0x24   :  { %3014 = vmatprep.mubr.msk.f32.mxu0 %vm3873_vm2, %v5372_v4  ;;  %3282 = vmatmul.mubr.msk.f32.gmra.mrb[4].mxu1 %vm156_vm0, %v118_v55  ;;  %v82_v55 = vld [vmem:[%s5366_s0 + $0x1e0] sm:$0xff] }
  0x25   :  { %3284 = vmatprep.mubr.msk.f32.mxu1 %vm3873_vm2, %v5372_v4 }
  0x27   :  { %3015 = vmatmul.mubr.msk.f32.gmra.mrb[14].mxu0 %vm156_vm0, %v29_v12 }
  0x28   :  { %3017 = vmatprep.mubr.msk.f32.mxu0 %vm3873_vm2, %v5372_v4  ;;  %3285 = vmatmul.mubr.msk.f32.gmra.mrb[6].mxu1 %vm156_vm0, %v119_v57 }
  0x29   :  { %3287 = vmatprep.mubr.msk.f32.mxu1 %vm3873_vm2, %v5372_v4 }
  0x2b   :  { %3018 = vmatmul.mubr.msk.f32.gmra.mrb[16].mxu0 %vm156_vm0, %v30_v13 }
  0x2c   :  { %3020 = vmatprep.mubr.msk.f32.mxu0 %vm3873_vm2, %v5372_v4  ;;  %3288 = vmatmul.mubr.msk.f32.gmra.mrb[8].mxu1 %vm156_vm0, %v120_v59 }
  0x2d   :  { %3290 = vmatprep.mubr.msk.f32.mxu1 %vm3873_vm2, %v5372_v4 }
  0x2f   :  { %3021 = vmatmul.mubr.msk.f32.gmra.mrb[18].mxu0 %vm156_vm0, %v31_v14 }
  0x30   :  { %3023 = vmatprep.mubr.msk.f32.mxu0 %vm3873_vm2, %v5372_v4  ;;  %3291 = vmatmul.mubr.msk.f32.gmra.mrb[10].mxu1 %vm156_vm0, %v121_v61 }
  0x31   :  { %3293 = vmatprep.mubr.msk.f32.mxu1 %vm3873_vm2, %v5372_v4 }
  0x33   :  { %3024 = vmatmul.mubr.msk.f32.gmra.mrb[20].mxu0 %vm156_vm0, %v32_v15 }
  0x34   :  { %3026 = vmatprep.mubr.msk.f32.mxu0 %vm3873_vm2, %v5372_v4  ;;  %3294 = vmatmul.mubr.msk.f32.gmra.mrb[12].mxu1 %vm156_vm0, %v122_v63 }
  0x35   :  { %3296 = vmatprep.mubr.msk.f32.mxu1 %vm3873_vm2, %v5372_v4 }
  0x37   :  { %3027 = vmatmul.mubr.msk.f32.gmra.mrb[22].mxu0 %vm156_vm0, %v33_v16  ;;  %v77_v16 = vld [vmem:[%s5366_s0 + $0x1b8] sm:$0xff] }
  0x38   :  { %3029 = vmatprep.mubr.msk.f32.mxu0 %vm3873_vm2, %v5372_v4  ;;  %3297 = vmatmul.mubr.msk.f32.gmra.mrb[14].mxu1 %vm156_vm0, %v123_v1  ;;  %v83_v1 = vld [vmem:[%s5366_s0 + $0x1e8] sm:$0xff] }
  0x39   :  { %3299 = vmatprep.mubr.msk.f32.mxu1 %vm3873_vm2, %v5372_v4 }
  0x3b   :  { %3030 = vmatmul.mubr.msk.f32.gmra.mrb[24].mxu0 %vm156_vm0, %v34_v17  ;;  %v126_v17 = vld [vmem:[%s5366_s0 + $0x340] sm:$0xff] }
  0x3c   :  { %3032 = vmatprep.mubr.msk.f32.mxu0 %vm3873_vm2, %v5372_v4  ;;  %3300 = vmatmul.mubr.msk.f32.gmra.mrb[16].mxu1 %vm156_vm0, %v124_v6 }
  0x3d   :  { %3302 = vmatprep.mubr.msk.f32.mxu1 %vm3873_vm2, %v5372_v4 }
  0x3f   :  { %3033 = vmatmul.mubr.msk.f32.gmra.mrb[26].mxu0 %vm156_vm0, %v35_v18 }
  0x40   :  { %3035 = vmatprep.mubr.msk.f32.mxu0 %vm3873_vm2, %v5372_v4  ;;  %3303 = vmatmul.mubr.msk.f32.gmra.mrb[18].mxu1 %vm156_vm0, %v125_v11 }
  0x41   :  { %3305 = vmatprep.mubr.msk.f32.mxu1 %vm3873_vm2, %v5372_v4 }
  0x43   :  { %3036 = vmatmul.mubr.msk.f32.gmra.mrb[28].mxu0 %vm156_vm0, %v36_v19 }
  0x44   :  { %3038 = vmatprep.mubr.msk.f32.mxu0 %vm3873_vm2, %v5372_v4  ;;  %3306 = vmatmul.mubr.msk.f32.gmra.mrb[20].mxu1 %vm156_vm0, %v126_v17 }
  0x45   :  { %3308 = vmatprep.mubr.msk.f32.mxu1 %vm3873_vm2, %v5372_v4 }
  0x47   :  { %3039 = vmatmul.mubr.msk.f32.gmra.mrb[30].mxu0 %vm156_vm0, %v37_v20 }
  0x48   :  { %3041 = vmatprep.mubr.msk.f32.mxu0 %vm3873_vm2, %v5372_v4 }
  0x4b   :  { %3042 = vmatmul.mubr.msk.f32.gmra.mrb[32].mxu0 %vm156_vm0, %v38_v21 }
  0x4c   :  { %3044 = vmatprep.mubr.msk.f32.mxu0 %vm3873_vm2, %v5372_v4 }
  0x4f   :  { %3045 = vmatmul.mubr.msk.f32.gmra.mrb[34].mxu0 %vm156_vm0, %v39_v22  ;;  %v78_v22 = vld [vmem:[%s5366_s0 + $0x1c0] sm:$0xff] }
  0x50   :  { %3047 = vmatprep.mubr.msk.f32.mxu0 %vm3873_vm2, %v5372_v4 }
  0x53   :  { %3048 = vmatmul.mubr.msk.f32.gmra.mrb[36].mxu0 %vm156_vm0, %v40_v23  ;;  %v127_v23 = vld [vmem:[%s5366_s0 + $0x348] sm:$0xff] }
  0x54   :  { %3050 = vmatprep.mubr.msk.f32.mxu0 %vm3873_vm2, %v5372_v4  ;;  %3309 = vmatmul.mubr.msk.f32.gmra.mrb[22].mxu1 %vm156_vm0, %v127_v23  ;;  %v85_v23 = vld [vmem:[%s5366_s0 + $0x1f8] sm:$0xff] }
  0x55   :  { %3311 = vmatprep.mubr.msk.f32.mxu1 %vm3873_vm2, %v5372_v4 }
  0x57   :  { %3051 = vmatmul.mubr.msk.f32.gmra.mrb[38].mxu0 %vm156_vm0, %v41_v24 }
  0x58   :  { %3053 = vmatprep.mubr.msk.f32.mxu0 %vm3873_vm2, %v5372_v4 }
  0x5b   :  { %3054 = vmatmul.mubr.msk.f32.gmra.mrb[40].mxu0 %vm156_vm0, %v42_v25 }
  0x5c   :  { %3056 = vmatprep.mubr.msk.f32.mxu0 %vm3873_vm2, %v5372_v4 }
  0x5f   :  { %3057 = vmatmul.mubr.msk.f32.gmra.mrb[42].mxu0 %vm156_vm0, %v43_v26 }
  0x60   :  { %3059 = vmatprep.mubr.msk.f32.mxu0 %vm3873_vm2, %v5372_v4 }
  0x63   :  { %3060 = vmatmul.mubr.msk.f32.gmra.mrb[44].mxu0 %vm156_vm0, %v44_v27 }
  0x64   :  { %3062 = vmatprep.mubr.msk.f32.mxu0 %vm3873_vm2, %v5372_v4 }
  0x67   :  { %3063 = vmatmul.mubr.msk.f32.gmra.mrb[46].mxu0 %vm156_vm0, %v45_v28  ;;  %v79_v28 = vld [vmem:[%s5366_s0 + $0x1c8] sm:$0xff] }
  0x68   :  { %3065 = vmatprep.mubr.msk.f32.mxu0 %vm3873_vm2, %v5372_v4 }
  0x6b   :  { %3066 = vmatmul.mubr.msk.f32.gmra.mrb[48].mxu0 %vm156_vm0, %v46_v29  ;;  %v128_v29 = vld [vmem:[%s5366_s0 + $0x350] sm:$0xff] }
  0x6c   :  { %3068 = vmatprep.mubr.msk.f32.mxu0 %vm3873_vm2, %v5372_v4  ;;  %3312 = vmatmul.mubr.msk.f32.gmra.mrb[24].mxu1 %vm156_vm0, %v128_v29 }
  0x6d   :  { %3314 = vmatprep.mubr.msk.f32.mxu1 %vm3873_vm2, %v5372_v4 }
  0x6f   :  { %3069 = vmatmul.mubr.msk.f32.gmra.mrb[50].mxu0 %vm156_vm0, %v47_v30 }
  0x70   :  { %3071 = vmatprep.mubr.msk.f32.mxu0 %vm3873_vm2, %v5372_v4 }
  0x73   :  { %3072 = vmatmul.mubr.msk.f32.gmra.mrb[52].mxu0 %vm156_vm0, %v48_v31 }
  0x74   :  { %3074 = vmatprep.mubr.msk.f32.mxu0 %vm3873_vm2, %v5372_v4 }
  0x77   :  { %3075 = vmatmul.mubr.msk.f32.gmra.mrb[54].mxu0 %vm156_vm0, %v49_v32 }
  0x78   :  { %3077 = vmatprep.mubr.msk.f32.mxu0 %vm3873_vm2, %v5372_v4 }
  0x7b   :  { %3078 = vmatmul.mubr.msk.f32.gmra.mrb[56].mxu0 %vm156_vm0, %v50_v33 }
  0x7c   :  { %3080 = vmatprep.mubr.msk.f32.mxu0 %vm3873_vm2, %v5372_v4 }
  0x7f   :  { %3081 = vmatmul.mubr.msk.f32.gmra.mrb[58].mxu0 %vm156_vm0, %v51_v34 }
  0x80   :  { %3083 = vmatprep.mubr.msk.f32.mxu0 %vm3873_vm2, %v5372_v4 }
  0x83   :  { %3084 = vmatmul.mubr.msk.f32.gmra.mrb[60].mxu0 %vm156_vm0, %v52_v35 }
  0x84   :  { %3086 = vmatprep.mubr.msk.f32.mxu0 %vm3873_vm2, %v5372_v4 }
  0x87   :  { %3087 = vmatmul.mubr.msk.f32.gmra.mrb[62].mxu0 %vm156_vm0, %v53_v36  ;;  %v80_v36 = vld [vmem:[%s5366_s0 + $0x1d0] sm:$0xff] }
  0x88   :  { %3089 = vmatprep.mubr.msk.f32.mxu0 %vm3873_vm2, %v5372_v4 }
  0x8b   :  { %3090 = vmatmul.mubr.msk.f32.gmra.mrb[64].mxu0 %vm156_vm0, %v54_v37  ;;  %v129_v37 = vld [vmem:[%s5366_s0 + $0x358] sm:$0xff] }
  0x8c   :  { %3092 = vmatprep.mubr.msk.f32.mxu0 %vm3873_vm2, %v5372_v4  ;;  %3315 = vmatmul.mubr.msk.f32.gmra.mrb[26].mxu1 %vm156_vm0, %v129_v37 }
  0x8d   :  { %3317 = vmatprep.mubr.msk.f32.mxu1 %vm3873_vm2, %v5372_v4 }
  0x8f   :  { %3093 = vmatmul.mubr.msk.f32.gmra.mrb[66].mxu0 %vm156_vm0, %v55_v38 }
  0x90   :  { %3095 = vmatprep.mubr.msk.f32.mxu0 %vm3873_vm2, %v5372_v4 }
  0x93   :  { %3096 = vmatmul.mubr.msk.f32.gmra.mrb[68].mxu0 %vm156_vm0, %v56_v39 }
  0x94   :  { %3098 = vmatprep.mubr.msk.f32.mxu0 %vm3873_vm2, %v5372_v4 }
  0x97   :  { %3099 = vmatmul.mubr.msk.f32.gmra.mrb[70].mxu0 %vm156_vm0, %v57_v40 }
  0x98   :  { %3101 = vmatprep.mubr.msk.f32.mxu0 %vm3873_vm2, %v5372_v4 }
  0x9b   :  { %3102 = vmatmul.mubr.msk.f32.gmra.mrb[72].mxu0 %vm156_vm0, %v58_v41 }
  0x9c   :  { %3104 = vmatprep.mubr.msk.f32.mxu0 %vm3873_vm2, %v5372_v4 }
  0x9f   :  { %3105 = vmatmul.mubr.msk.f32.gmra.mrb[74].mxu0 %vm156_vm0, %v59_v42 }
  0xa0   :  { %3107 = vmatprep.mubr.msk.f32.mxu0 %vm3873_vm2, %v5372_v4 }
  0xa3   :  { %3108 = vmatmul.mubr.msk.f32.gmra.mrb[76].mxu0 %vm156_vm0, %v60_v43 }
  0xa4   :  { %3110 = vmatprep.mubr.msk.f32.mxu0 %vm3873_vm2, %v5372_v4 }
  0xa7   :  { %3111 = vmatmul.mubr.msk.f32.gmra.mrb[78].mxu0 %vm156_vm0, %v61_v44 }
  0xa8   :  { %3113 = vmatprep.mubr.msk.f32.mxu0 %vm3873_vm2, %v5372_v4 }
  0xab   :  { %3114 = vmatmul.mubr.msk.f32.gmra.mrb[80].mxu0 %vm156_vm0, %v62_v45 }
  0xac   :  { %3116 = vmatprep.mubr.msk.f32.mxu0 %vm3873_vm2, %v5372_v4 }
  0xaf   :  { %3117 = vmatmul.mubr.msk.f32.gmra.mrb[82].mxu0 %vm156_vm0, %v63_v46  ;;  %v81_v46 = vld [vmem:[%s5366_s0 + $0x1d8] sm:$0xff] }
  0xb0   :  { %3119 = vmatprep.mubr.msk.f32.mxu0 %vm3873_vm2, %v5372_v4 }
  0xb3   :  { %3120 = vmatmul.mubr.msk.f32.gmra.mrb[84].mxu0 %vm156_vm0, %v64_v47  ;;  %v130_v47 = vld [vmem:[%s5366_s0 + $0x360] sm:$0xff] }
  0xb4   :  { %3122 = vmatprep.mubr.msk.f32.mxu0 %vm3873_vm2, %v5372_v4  ;;  %3318 = vmatmul.mubr.msk.f32.gmra.mrb[28].mxu1 %vm156_vm0, %v130_v47 }
  0xb5   :  { %3320 = vmatprep.mubr.msk.f32.mxu1 %vm3873_vm2, %v5372_v4 }
  0xb7   :  { %3123 = vmatmul.mubr.msk.f32.gmra.mrb[86].mxu0 %vm156_vm0, %v65_v48 }
  0xb8   :  { %3125 = vmatprep.mubr.msk.f32.mxu0 %vm3873_vm2, %v5372_v4 }
  0xbb   :  { %3126 = vmatmul.mubr.msk.f32.gmra.mrb[88].mxu0 %vm156_vm0, %v66_v49 }
  0xbc   :  { %3128 = vmatprep.mubr.msk.f32.mxu0 %vm3873_vm2, %v5372_v4 }
  0xbf   :  { %3129 = vmatmul.mubr.msk.f32.gmra.mrb[90].mxu0 %vm156_vm0, %v67_v51 }
  0xc0   :  { %3131 = vmatprep.mubr.msk.f32.mxu0 %vm3873_vm2, %v5372_v4 }
  0xc3   :  { %3132 = vmatmul.mubr.msk.f32.gmra.mrb[92].mxu0 %vm156_vm0, %v68_v52 }
  0xc4   :  { %3134 = vmatprep.mubr.msk.f32.mxu0 %vm3873_vm2, %v5372_v4 }
  0xc7   :  { %3135 = vmatmul.mubr.msk.f32.gmra.mrb[94].mxu0 %vm156_vm0, %v69_v54 }
  0xc8   :  { %3137 = vmatprep.mubr.msk.f32.mxu0 %vm3873_vm2, %v5372_v4 }
  0xcb   :  { %3138 = vmatmul.mubr.msk.f32.gmra.mrb[96].mxu0 %vm156_vm0, %v70_v56  ;;  %v131_v56 = vld [vmem:[%s5366_s0 + $0x368] sm:$0xff] }
  0xcc   :  { %3140 = vmatprep.mubr.msk.f32.mxu0 %vm3873_vm2, %v5372_v4  ;;  %3321 = vmatmul.mubr.msk.f32.gmra.mrb[30].mxu1 %vm156_vm0, %v131_v56 }
  0xcd   :  { %3323 = vmatprep.mubr.msk.f32.mxu1 %vm3873_vm2, %v5372_v4 }
  0xcf   :  { %3141 = vmatmul.mubr.msk.f32.gmra.mrb[98].mxu0 %vm156_vm0, %v71_v58 }
  0xd0   :  { %3143 = vmatprep.mubr.msk.f32.mxu0 %vm3873_vm2, %v5372_v4 }
  0xd3   :  { %3144 = vmatmul.mubr.msk.f32.gmra.mrb[100].mxu0 %vm156_vm0, %v72_v60 }
  0xd4   :  { %3146 = vmatprep.mubr.msk.f32.mxu0 %vm3873_vm2, %v5372_v4 }
  0xd7   :  { %3147 = vmatmul.mubr.msk.f32.gmra.mrb[102].mxu0 %vm156_vm0, %v73_v62 }
  0xd8   :  { %3149 = vmatprep.mubr.msk.f32.mxu0 %vm3873_vm2, %v5372_v4 }
  0xdb   :  { %3150 = vmatmul.mubr.msk.f32.gmra.mrb[104].mxu0 %vm156_vm0, %v74_v0 }
  0xdc   :  { %3152 = vmatprep.mubr.msk.f32.mxu0 %vm3873_vm2, %v5372_v4 }
  0xde   :  { %v604_v7 = vpop.f32.mrb[0].mxu0 }
  0xdf   :  { %v605_v8 = vadd.f32 %v4288_v3, %v604_v7  ;;  %v2995_v9 = vpop.f32.mrb[1].mxu0  ;;  %3153 = vmatmul.mubr.msk.f32.gmra.mrb[106].mxu0 %vm156_vm0, %v75_v5  ;;  %v132_v5 = vld [vmem:[%s5366_s0 + $0x370] sm:$0xff] }
  0xe0   :  { %3155 = vmatprep.mubr.msk.f32.mxu0 %vm3873_vm2, %v5372_v4  ;;  %3324 = vmatmul.mubr.msk.f32.gmra.mrb[32].mxu1 %vm156_vm0, %v132_v5  ;;  %v89_v5 = vld [vmem:[%s5366_s0 + $0x218] sm:$0xff] }
  0xe1   :  { %v1228_v12 = vmul.f32 0.5, %v605_v8  ;;  %3326 = vmatprep.mubr.msk.f32.mxu1 %vm3873_vm2, %v5372_v4 }
  0xe2   :  { %v609_v13 = vpop.f32.mrb[2].mxu0 }
  0xe3   :  { %3579 = vtanh.f32 %v1228_v12  ;;  %v610_v14 = vadd.f32 %v4288_v3, %v609_v13  ;;  %v2998_v15 = vpop.f32.mrb[3].mxu0  ;;  %3156 = vmatmul.mubr.msk.f32.gmra.mrb[108].mxu0 %vm156_vm0, %v76_v10  ;;  %v84_v13 = vld [vmem:[%s5366_s0 + $0x1f0] sm:$0xff] }
  0xe4   :  { %3158 = vmatprep.mubr.msk.f32.mxu0 %vm3873_vm2, %v5372_v4 }
  0xe5   :  { %v1229_v18 = vmul.f32 0.5, %v610_v14  ;;  %v133_v14 = vld [vmem:[%s5366_s0 + $0x378] sm:$0xff] }
  0xe6   :  { %v614_v19 = vpop.f32.mrb[4].mxu0  ;;  %3327 = vmatmul.mubr.msk.f32.gmra.mrb[34].mxu1 %vm156_vm0, %v133_v14 }
  0xe7   :  { %3581 = vtanh.f32 %v1229_v18  ;;  %v615_v20 = vadd.f32 %v4288_v3, %v614_v19  ;;  %v3001_v21 = vpop.f32.mrb[5].mxu0  ;;  %3159 = vmatmul.mubr.msk.f32.gmra.mrb[110].mxu0 %vm156_vm0, %v77_v16  ;;  %3329 = vmatprep.mubr.msk.f32.mxu1 %vm3873_vm2, %v5372_v4 }
  0xe8   :  { %3161 = vmatprep.mubr.msk.f32.mxu0 %vm3873_vm2, %v5372_v4 }
  0xe9   :  { %v1230_v24 = vmul.f32 0.5, %v615_v20 }
  0xea   :  { %v619_v25 = vpop.f32.mrb[6].mxu0 }
  0xeb   :  { %3583 = vtanh.f32 %v1230_v24  ;;  %v620_v26 = vadd.f32 %v4288_v3, %v619_v25  ;;  %v3004_v27 = vpop.f32.mrb[7].mxu0  ;;  %3162 = vmatmul.mubr.msk.f32.gmra.mrb[112].mxu0 %vm156_vm0, %v78_v22  ;;  %v134_v24 = vld [vmem:[%s5366_s0 + $0x380] sm:$0xff] }
  0xec   :  { %3164 = vmatprep.mubr.msk.f32.mxu0 %vm3873_vm2, %v5372_v4  ;;  %3330 = vmatmul.mubr.msk.f32.gmra.mrb[36].mxu1 %vm156_vm0, %v134_v24 }
  0xed   :  { %v3580_v30 = vpop.eup %3579  ;;  %v1231_v31 = vmul.f32 0.5, %v620_v26  ;;  %3332 = vmatprep.mubr.msk.f32.mxu1 %vm3873_vm2, %v5372_v4 }
  0xee   :  { %v624_v32 = vpop.f32.mrb[8].mxu0  ;;  %v1478_v35 = vmul.f32 0.5, %v3580_v30 }
  0xef   :  { %3585 = vtanh.f32 %v1231_v31  ;;  %v625_v33 = vadd.f32 %v4288_v3, %v624_v32  ;;  %v3007_v34 = vpop.f32.mrb[9].mxu0  ;;  %3165 = vmatmul.mubr.msk.f32.gmra.mrb[114].mxu0 %vm156_vm0, %v79_v28  ;;  %v86_v32 = vld [vmem:[%s5366_s0 + $0x200] sm:$0xff] }
  0xf0   :  { %3167 = vmatprep.mubr.msk.f32.mxu0 %vm3873_vm2, %v5372_v4  ;;  %v4368_v44 = vadd.f32 0.5, %v1478_v35 }
  0xf1   :  { %v3582_v38 = vpop.eup %3581  ;;  %v1232_v39 = vmul.f32 0.5, %v625_v33  ;;  %v135_v33 = vld [vmem:[%s5366_s0 + $0x388] sm:$0xff] }
  0xf2   :  { %v1479_v40 = vmul.f32 0.5, %v3582_v38  ;;  %v629_v41 = vpop.f32.mrb[10].mxu0  ;;  %3333 = vmatmul.mubr.msk.f32.gmra.mrb[38].mxu1 %vm156_vm0, %v135_v33 }
  0xf3   :  { %3587 = vtanh.f32 %v1232_v39  ;;  %v630_v42 = vadd.f32 %v4288_v3, %v629_v41  ;;  %v3010_v43 = vpop.f32.mrb[11].mxu0  ;;  %3168 = vmatmul.mubr.msk.f32.gmra.mrb[116].mxu0 %vm156_vm0, %v80_v36  ;;  %3335 = vmatprep.mubr.msk.f32.mxu1 %vm3873_vm2, %v5372_v4 }
  0xf4   :  { %v4370_v45 = vadd.f32 0.5, %v1479_v40  ;;  %3170 = vmatprep.mubr.msk.f32.mxu0 %vm3873_vm2, %v5372_v4  ;;  %v136_v43 = vld [vmem:[%s5366_s0 + $0x390] sm:$0xff] }
  0xf5   :  { %v3584_v48 = vpop.eup %3583  ;;  %v1233_v49 = vmul.f32 0.5, %v630_v42  ;;  %v87_v42 = vld [vmem:[%s5366_s0 + $0x208] sm:$0xff] }
  0xf6   :  { %v3375_v50 = vpack.c.bf16 %v4370_v45, %v4368_v44  ;;  %v634_v51 = vpop.f32.mrb[12].mxu0  ;;  %v1480_v54 = vmul.f32 0.5, %v3584_v48  ;;  %3336 = vmatmul.mubr.msk.f32.gmra.mrb[40].mxu1 %vm156_vm0, %v136_v43  ;;  %v99_v44 = vld [vmem:[%s5366_s0 + $0x268] sm:$0xff] }
  0xf7   :  { %3589 = vtanh.f32 %v1233_v49  ;;  %v635_v52 = vadd.f32 %v4288_v3, %v634_v51  ;;  %v3013_v53 = vpop.f32.mrb[13].mxu0  ;;  %3171 = vmatmul.mubr.msk.f32.gmra.mrb[118].mxu0 %vm156_vm0, %v81_v46  ;;  %3338 = vmatprep.mubr.msk.f32.mxu1 %vm3873_vm2, %v5372_v4 }
  0xf8   :  { %3173 = vmatprep.mubr.msk.f32.mxu0 %vm3873_vm2, %v5372_v4  ;;  %v4400_v63 = vadd.f32 0.5, %v1480_v54  ;;  %v88_v54 = vld [vmem:[%s5366_s0 + $0x210] sm:$0xff] }
  0xf9   :  { %v3586_v57 = vpop.eup %3585  ;;  %v1234_v58 = vmul.f32 0.5, %v635_v52 }
  0xfa   :  { %v1481_v59 = vmul.f32 0.5, %v3586_v57  ;;  %v639_v60 = vpop.f32.mrb[14].mxu0 }
  0xfb   :  { %3591 = vtanh.f32 %v1234_v58  ;;  %v640_v61 = vadd.f32 %v4288_v3, %v639_v60  ;;  %v3016_v62 = vpop.f32.mrb[15].mxu0  ;;  %3174 = vmatmul.mubr.msk.f32.gmra.mrb[120].mxu0 %vm156_vm0, %v82_v55  ;;  %v137_v55 = vld [vmem:[%s5366_s0 + $0x398] sm:$0xff] }
  0xfc   :  { %v4402_v0 = vadd.f32 0.5, %v1481_v59  ;;  %3176 = vmatprep.mubr.msk.f32.mxu0 %vm3873_vm2, %v5372_v4  ;;  %3339 = vmatmul.mubr.msk.f32.gmra.mrb[42].mxu1 %vm156_vm0, %v137_v55 }
  0xfd   :  { %v3588_v6 = vpop.eup %3587  ;;  %v1235_v7 = vmul.f32 0.5, %v640_v61  ;;  %3341 = vmatprep.mubr.msk.f32.mxu1 %vm3873_vm2, %v5372_v4 }
  0xfe   :  { %v3381_v8 = vpack.c.bf16 %v4402_v0, %v4400_v63  ;;  %v644_v9 = vpop.f32.mrb[16].mxu0  ;;  %v1482_v12 = vmul.f32 0.5, %v3588_v6  ;;  %v138_v6 = vld [vmem:[%s5366_s0 + $0x3a0] sm:$0xff]  ;;  %v101_v63 = vld [vmem:[%s5366_s0 + $0x278] sm:$0xff] }
  0xff   :  { %3593 = vtanh.f32 %v1235_v7  ;;  %v645_v10 = vadd.f32 %v4288_v3, %v644_v9  ;;  %v3019_v11 = vpop.f32.mrb[17].mxu0  ;;  %3177 = vmatmul.mubr.msk.f32.gmra.mrb[122].mxu0 %vm156_vm0, %v83_v1 }
 0x100   :  { %3179 = vmatprep.mubr.msk.f32.mxu0 %vm3873_vm2, %v5372_v4  ;;  %v4432_v21 = vadd.f32 0.5, %v1482_v12  ;;  %3342 = vmatmul.mubr.msk.f32.gmra.mrb[44].mxu1 %vm156_vm0, %v138_v6  ;;  %v143_v6 = vld [vmem:[%s5366_s0 + $0x3c8] sm:$0xff] }
 0x101   :  { %v3590_v15 = vpop.eup %3589  ;;  %v1236_v16 = vmul.f32 0.5, %v645_v10  ;;  %3344 = vmatprep.mubr.msk.f32.mxu1 %vm3873_vm2, %v5372_v4 }
 0x102   :  { %v1483_v17 = vmul.f32 0.5, %v3590_v15  ;;  %v649_v18 = vpop.f32.mrb[18].mxu0  ;;  %v90_v15 = vld [vmem:[%s5366_s0 + $0x220] sm:$0xff] }
 0x103   :  { %3595 = vtanh.f32 %v1236_v16  ;;  %v650_v19 = vadd.f32 %v4288_v3, %v649_v18  ;;  %v3022_v20 = vpop.f32.mrb[19].mxu0  ;;  %3180 = vmatmul.mubr.msk.f32.gmra.mrb[124].mxu0 %vm156_vm0, %v84_v13  ;;  %v139_v16 = vld [vmem:[%s5366_s0 + $0x3a8] sm:$0xff] }
 0x104   :  { %v4434_v22 = vadd.f32 0.5, %v1483_v17  ;;  %3182 = vmatprep.mubr.msk.f32.mxu0 %vm3873_vm2, %v5372_v4  ;;  %3345 = vmatmul.mubr.msk.f32.gmra.mrb[46].mxu1 %vm156_vm0, %v139_v16 }
 0x105   :  { %v3592_v25 = vpop.eup %3591  ;;  %v1237_v26 = vmul.f32 0.5, %v650_v19  ;;  %3347 = vmatprep.mubr.msk.f32.mxu1 %vm3873_vm2, %v5372_v4 }
 0x106   :  { %v3387_v27 = vpack.c.bf16 %v4434_v22, %v4432_v21  ;;  %v654_v28 = vpop.f32.mrb[20].mxu0  ;;  %v1484_v31 = vmul.f32 0.5, %v3592_v25  ;;  %v103_v21 = vld [vmem:[%s5366_s0 + $0x288] sm:$0xff] }
 0x107   :  { %3597 = vtanh.f32 %v1237_v26  ;;  %v655_v29 = vadd.f32 %v4288_v3, %v654_v28  ;;  %v3025_v30 = vpop.f32.mrb[21].mxu0  ;;  %3183 = vmatmul.mubr.msk.f32.gmra.mrb[126].mxu0 %vm156_vm0, %v85_v23  ;;  %v91_v28 = vld [vmem:[%s5366_s0 + $0x228] sm:$0xff] }
 0x108   :  { %3185 = vmatprep.mubr.msk.f32.mxu0 %vm3873_vm2, %v5372_v4  ;;  %v4464_v40 = vadd.f32 0.5, %v1484_v31 }
 0x109   :  { %v3594_v34 = vpop.eup %3593  ;;  %v1238_v35 = vmul.f32 0.5, %v655_v29  ;;  %v140_v29 = vld [vmem:[%s5366_s0 + $0x3b0] sm:$0xff] }
 0x10a   :  { %v1485_v36 = vmul.f32 0.5, %v3594_v34  ;;  %v659_v37 = vpop.f32.mrb[22].mxu0  ;;  %3348 = vmatmul.mubr.msk.f32.gmra.mrb[48].mxu1 %vm156_vm0, %v140_v29 }
 0x10b   :  { %3599 = vtanh.f32 %v1238_v35  ;;  %v660_v38 = vadd.f32 %v4288_v3, %v659_v37  ;;  %v3028_v39 = vpop.f32.mrb[23].mxu0  ;;  %3186 = vmatmul.mubr.msk.f32.gmra.mrb[128].mxu0 %vm156_vm0, %v86_v32  ;;  %3350 = vmatprep.mubr.msk.f32.mxu1 %vm3873_vm2, %v5372_v4  ;;  %v92_v37 = vld [vmem:[%s5366_s0 + $0x230] sm:$0xff] }
 0x10c   :  { %v4466_v41 = vadd.f32 0.5, %v1485_v36  ;;  %3188 = vmatprep.mubr.msk.f32.mxu0 %vm3873_vm2, %v5372_v4 }
 0x10d   :  { %v3596_v46 = vpop.eup %3595  ;;  %v1239_v47 = vmul.f32 0.5, %v660_v38  ;;  %v141_v38 = vld [vmem:[%s5366_s0 + $0x3b8] sm:$0xff] }
 0x10e   :  { %v3393_v48 = vpack.c.bf16 %v4466_v41, %v4464_v40  ;;  %v664_v49 = vpop.f32.mrb[24].mxu0  ;;  %v1486_v53 = vmul.f32 0.5, %v3596_v46  ;;  %3351 = vmatmul.mubr.msk.f32.gmra.mrb[50].mxu1 %vm156_vm0, %v141_v38  ;;  %v105_v40 = vld [vmem:[%s5366_s0 + $0x298] sm:$0xff] }
 0x10f   :  { %3601 = vtanh.f32 %v1239_v47  ;;  %v665_v51 = vadd.f32 %v4288_v3, %v664_v49  ;;  %v3031_v52 = vpop.f32.mrb[25].mxu0  ;;  %3189 = vmatmul.mubr.msk.f32.gmra.mrb[130].mxu0 %vm156_vm0, %v87_v42  ;;  %3353 = vmatprep.mubr.msk.f32.mxu1 %vm3873_vm2, %v5372_v4 }
 0x110   :  { %3191 = vmatprep.mubr.msk.f32.mxu0 %vm3873_vm2, %v5372_v4  ;;  %v4496_v62 = vadd.f32 0.5, %v1486_v53  ;;  %v93_v53 = vld [vmem:[%s5366_s0 + $0x238] sm:$0xff] }
 0x111   :  { %v3598_v56 = vpop.eup %3597  ;;  %v1240_v57 = vmul.f32 0.5, %v665_v51 }
 0x112   :  { %v1487_v58 = vmul.f32 0.5, %v3598_v56  ;;  %v669_v59 = vpop.f32.mrb[26].mxu0 }
 0x113   :  { %3603 = vtanh.f32 %v1240_v57  ;;  %v670_v60 = vadd.f32 %v4288_v3, %v669_v59  ;;  %v3034_v61 = vpop.f32.mrb[27].mxu0  ;;  %3192 = vmatmul.mubr.msk.f32.gmra.mrb[132].mxu0 %vm156_vm0, %v88_v54  ;;  %v142_v54 = vld [vmem:[%s5366_s0 + $0x3c0] sm:$0xff] }
 0x114   :  { %v4498_v1 = vadd.f32 0.5, %v1487_v58  ;;  %3194 = vmatprep.mubr.msk.f32.mxu0 %vm3873_vm2, %v5372_v4  ;;  %3354 = vmatmul.mubr.msk.f32.gmra.mrb[52].mxu1 %vm156_vm0, %v142_v54 }
 0x115   :  { %v3600_v7 = vpop.eup %3599  ;;  %v1241_v9 = vmul.f32 0.5, %v670_v60  ;;  %3356 = vmatprep.mubr.msk.f32.mxu1 %vm3873_vm2, %v5372_v4 }
 0x116   :  { %v3399_v10 = vpack.c.bf16 %v4498_v1, %v4496_v62  ;;  %v674_v11 = vpop.f32.mrb[28].mxu0  ;;  %v1488_v14 = vmul.f32 0.5, %v3600_v7  ;;  %v107_v62 = vld [vmem:[%s5366_s0 + $0x2a8] sm:$0xff] }
 0x117   :  { %3605 = vtanh.f32 %v1241_v9  ;;  %v675_v12 = vadd.f32 %v4288_v3, %v674_v11  ;;  %v3037_v13 = vpop.f32.mrb[29].mxu0  ;;  %3195 = vmatmul.mubr.msk.f32.gmra.mrb[134].mxu0 %vm156_vm0, %v89_v5  ;;  %v94_v5 = vld [vmem:[%s5366_s0 + $0x240] sm:$0xff] }
 0x118   :  { %3197 = vmatprep.mubr.msk.f32.mxu0 %vm3873_vm2, %v5372_v4  ;;  %v4528_v25 = vadd.f32 0.5, %v1488_v14  ;;  %3357 = vmatmul.mubr.msk.f32.gmra.mrb[54].mxu1 %vm156_vm0, %v143_v6 }
 0x119   :  { %v3602_v17 = vpop.eup %3601  ;;  %v1242_v18 = vmul.f32 0.5, %v675_v12  ;;  %3359 = vmatprep.mubr.msk.f32.mxu1 %vm3873_vm2, %v5372_v4 }
 0x11a   :  { %v1489_v19 = vmul.f32 0.5, %v3602_v17  ;;  %v679_v20 = vpop.f32.mrb[30].mxu0  ;;  %v95_v17 = vld [vmem:[%s5366_s0 + $0x248] sm:$0xff] }
 0x11b   :  { %3607 = vtanh.f32 %v1242_v18  ;;  %v680_v23 = vadd.f32 %v4288_v3, %v679_v20  ;;  %v3040_v24 = vpop.f32.mrb[31].mxu0  ;;  %3198 = vmatmul.mubr.msk.f32.gmra.mrb[136].mxu0 %vm156_vm0, %v90_v15  ;;  %v144_v18 = vld [vmem:[%s5366_s0 + $0x3d0] sm:$0xff] }
 0x11c   :  { %v4530_v26 = vadd.f32 0.5, %v1489_v19  ;;  %3200 = vmatprep.mubr.msk.f32.mxu0 %vm3873_vm2, %v5372_v4  ;;  %3360 = vmatmul.mubr.msk.f32.gmra.mrb[56].mxu1 %vm156_vm0, %v144_v18 }
 0x11d   :  { %v3604_v30 = vpop.eup %3603  ;;  %v1243_v31 = vmul.f32 0.5, %v680_v23  ;;  %3362 = vmatprep.mubr.msk.f32.mxu1 %vm3873_vm2, %v5372_v4 }
 0x11e   :  { %v3405_v32 = vpack.c.bf16 %v4530_v26, %v4528_v25  ;;  %v684_v33 = vpop.f32.mrb[32].mxu0  ;;  %v1490_v36 = vmul.f32 0.5, %v3604_v30  ;;  %v109_v25 = vld [vmem:[%s5366_s0 + $0x2b8] sm:$0xff] }
 0x11f   :  { %3609 = vtanh.f32 %v1243_v31  ;;  %v685_v34 = vadd.f32 %v4288_v3, %v684_v33  ;;  %v3043_v35 = vpop.f32.mrb[33].mxu0  ;;  %3201 = vmatmul.mubr.msk.f32.gmra.mrb[138].mxu0 %vm156_vm0, %v91_v28  ;;  %v96_v31 = vld [vmem:[%s5366_s0 + $0x250] sm:$0xff]  ;;  %v145_v33 = vld [vmem:[%s5366_s0 + $0x3d8] sm:$0xff] }
 0x120   :  { %3203 = vmatprep.mubr.msk.f32.mxu0 %vm3873_vm2, %v5372_v4  ;;  %v4560_v51 = vadd.f32 0.5, %v1490_v36  ;;  %3363 = vmatmul.mubr.msk.f32.gmra.mrb[58].mxu1 %vm156_vm0, %v145_v33 }
 0x121   :  { %v3606_v39 = vpop.eup %3605  ;;  %v1244_v42 = vmul.f32 0.5, %v685_v34  ;;  %3365 = vmatprep.mubr.msk.f32.mxu1 %vm3873_vm2, %v5372_v4 }
 0x122   :  { %v1491_v43 = vmul.f32 0.5, %v3606_v39  ;;  %v689_v46 = vpop.f32.mrb[34].mxu0 }
 0x123   :  { %3611 = vtanh.f32 %v1244_v42  ;;  %v690_v47 = vadd.f32 %v4288_v3, %v689_v46  ;;  %v3046_v49 = vpop.f32.mrb[35].mxu0  ;;  %3204 = vmatmul.mubr.msk.f32.gmra.mrb[140].mxu0 %vm156_vm0, %v92_v37  ;;  %v97_v46 = vld [vmem:[%s5366_s0 + $0x258] sm:$0xff] }
 0x124   :  { %v4562_v52 = vadd.f32 0.5, %v1491_v43  ;;  %3206 = vmatprep.mubr.msk.f32.mxu0 %vm3873_vm2, %v5372_v4 }
 0x125   :  { %v3608_v55 = vpop.eup %3607  ;;  %v1245_v56 = vmul.f32 0.5, %v690_v47  ;;  %v146_v47 = vld [vmem:[%s5366_s0 + $0x3e0] sm:$0xff] }
 0x126   :  { %v3411_v57 = vpack.c.bf16 %v4562_v52, %v4560_v51  ;;  %v694_v58 = vpop.f32.mrb[36].mxu0  ;;  %v1492_v61 = vmul.f32 0.5, %v3608_v55  ;;  %3366 = vmatmul.mubr.msk.f32.gmra.mrb[60].mxu1 %vm156_vm0, %v146_v47  ;;  %v111_v51 = vld [vmem:[%s5366_s0 + $0x2c8] sm:$0xff] }
 0x127   :  { %3613 = vtanh.f32 %v1245_v56  ;;  %v695_v59 = vadd.f32 %v4288_v3, %v694_v58  ;;  %v3049_v60 = vpop.f32.mrb[37].mxu0  ;;  %3207 = vmatmul.mubr.msk.f32.gmra.mrb[142].mxu0 %vm156_vm0, %v93_v53 }
 0x128   :  { %3209 = vmatprep.mubr.msk.f32.mxu0 %vm3873_vm2, %v5372_v4  ;;  %v4592_v15 = vadd.f32 0.5, %v1492_v61  ;;  %v4644_v60 = vld [vmem:[%s5369_s3] sm:$0x1] }
 0x129   :  { %v3610_v7 = vpop.eup %3609  ;;  %v1246_v9 = vmul.f32 0.5, %v695_v59  ;;  %2919 = vmatprep.mubr.msk.f32.mxu1 %vm1731_vm3, %v4644_v60 }
 0x12a   :  { %v1493_v11 = vmul.f32 0.5, %v3610_v7  ;;  %v699_v12 = vpop.f32.mrb[38].mxu0 }
 0x12b   :  { %3615 = vtanh.f32 %v1246_v9  ;;  %v700_v13 = vadd.f32 %v4288_v3, %v699_v12  ;;  %v3052_v14 = vpop.f32.mrb[39].mxu0  ;;  %3210 = vmatmul.mubr.msk.f32.gmra.mrb[144].mxu0 %vm156_vm0, %v94_v5  ;;  %v98_v5 = vld [vmem:[%s5366_s0 + $0x260] sm:$0xff] }
 0x12c   :  { %v4594_v16 = vadd.f32 0.5, %v1493_v11  ;;  %3212 = vmatprep.mubr.msk.f32.mxu0 %vm3873_vm2, %v5372_v4 }
 0x12d   :  { %v3612_v19 = vpop.eup %3611  ;;  %v1247_v20 = vmul.f32 0.5, %v700_v13 }
 0x12e   :  { %v3417_v23 = vpack.c.bf16 %v4594_v16, %v4592_v15  ;;  %v704_v24 = vpop.f32.mrb[40].mxu0  ;;  %v1494_v30 = vmul.f32 0.5, %v3612_v19  ;;  %v113_v15 = vld [vmem:[%s5366_s0 + $0x2d8] sm:$0xff] }
 0x12f   :  { %3617 = vtanh.f32 %v1247_v20  ;;  %v705_v28 = vadd.f32 %v4288_v3, %v704_v24  ;;  %v3055_v29 = vpop.f32.mrb[41].mxu0  ;;  %3213 = vmatmul.mubr.msk.f32.gmra.mrb[146].mxu0 %vm156_vm0, %v95_v17 }
 0x130   :  { %3215 = vmatprep.mubr.msk.f32.mxu0 %vm3873_vm2, %v5372_v4  ;;  %v1619_v42 = vadd.f32 0.5, %v1494_v30  ;;  %v100_v29 = vld [vmem:[%s5366_s0 + $0x270] sm:$0xff] }
 0x131   :  { %v3614_v34 = vpop.eup %3613  ;;  %v1248_v35 = vmul.f32 0.5, %v705_v28 }
 0x132   :  { %v1495_v36 = vmul.f32 0.5, %v3614_v34  ;;  %v709_v37 = vpop.f32.mrb[42].mxu0 }
 0x133   :  { %3619 = vtanh.f32 %v1248_v35  ;;  %v710_v38 = vadd.f32 %v4288_v3, %v709_v37  ;;  %v3058_v39 = vpop.f32.mrb[43].mxu0  ;;  %3216 = vmatmul.mubr.msk.f32.gmra.mrb[148].mxu0 %vm156_vm0, %v96_v31 }
 0x134   :  { %v1620_v43 = vadd.f32 0.5, %v1495_v36  ;;  %3218 = vmatprep.mubr.msk.f32.mxu0 %vm3873_vm2, %v5372_v4 }
 0x135   :  { %v3616_v49 = vpop.eup %3615  ;;  %v1249_v53 = vmul.f32 0.5, %v710_v38 }
 0x136   :  { %v3372_v55 = vpack.c.bf16 %v1620_v43, %v1619_v42  ;;  %v714_v56 = vpop.f32.mrb[44].mxu0  ;;  %v1496_v61 = vmul.f32 0.5, %v3616_v49  ;;  %v102_v49 = vld [vmem:[%s5366_s0 + $0x280] sm:$0xff] }
 0x137   :  { %3621 = vtanh.f32 %v1249_v53  ;;  %v715_v58 = vadd.f32 %v4288_v3, %v714_v56  ;;  %v3061_v59 = vpop.f32.mrb[45].mxu0  ;;  %3219 = vmatmul.mubr.msk.f32.gmra.mrb[150].mxu0 %vm156_vm0, %v97_v46 }
 0x138   :  { %3374 = vmatprep.subr.msk.bf16.mxu1 %vm4634_vm4, %v3372_v55  ;;  %3221 = vmatprep.mubr.msk.f32.mxu0 %vm3873_vm2, %v5372_v4  ;;  %v1621_v14 = vadd.f32 0.5, %v1496_v61 }
 0x139   :  { %v3618_v6 = vpop.eup %3617  ;;  %v1250_v7 = vmul.f32 0.5, %v715_v58  ;;  %3377 = vmatpush3.bf16.xpose.msk.msra.mxu1 %vm4634_vm4, %v3375_v50 }
 0x13a   :  { %v1497_v9 = vmul.f32 0.5, %v3618_v6  ;;  %v719_v11 = vpop.f32.mrb[46].mxu0 }
 0x13b   :  { %3623 = vtanh.f32 %v1250_v7  ;;  %v720_v12 = vadd.f32 %v4288_v3, %v719_v11  ;;  %v3064_v13 = vpop.f32.mrb[47].mxu0  ;;  %3222 = vmatmul.mubr.msk.f32.gmra.mrb[152].mxu0 %vm156_vm0, %v98_v5 }
 0x13c   :  { %v1622_v17 = vadd.f32 0.5, %v1497_v9  ;;  %3224 = vmatprep.mubr.msk.f32.mxu0 %vm3873_vm2, %v5372_v4 }
 0x13d   :  { %v3620_v45 = vpop.eup %3619  ;;  %v1251_v50 = vmul.f32 0.5, %v720_v12 }
 0x13e   :  { %v3378_v18 = vpack.c.bf16 %v1622_v17, %v1621_v14  ;;  %v724_v19 = vpop.f32.mrb[48].mxu0  ;;  %v1498_v28 = vmul.f32 0.5, %v3620_v45  ;;  %v104_v14 = vld [vmem:[%s5366_s0 + $0x290] sm:$0xff] }
 0x13f   :  { %3625 = vtanh.f32 %v1251_v50  ;;  %v725_v20 = vadd.f32 %v4288_v3, %v724_v19  ;;  %v3067_v24 = vpop.f32.mrb[49].mxu0  ;;  %3225 = vmatmul.mubr.msk.f32.gmra.mrb[154].mxu0 %vm156_vm0, %v99_v44 }
 0x140   :  { %3380 = vmatprep.subr.msk.bf16.mxu1 %vm4634_vm4, %v3378_v18  ;;  %3227 = vmatprep.mubr.msk.f32.mxu0 %vm3873_vm2, %v5372_v4  ;;  %v1623_v37 = vadd.f32 0.5, %v1498_v28 }
 0x141   :  { %v3622_v30 = vpop.eup %3621  ;;  %v1252_v31 = vmul.f32 0.5, %v725_v20  ;;  %3383 = vmatpush3.bf16.xpose.msk.msra.mxu1 %vm4634_vm4, %v3381_v8 }
 0x142   :  { %v1499_v33 = vmul.f32 0.5, %v3622_v30  ;;  %v729_v34 = vpop.f32.mrb[50].mxu0 }
 0x143   :  { %3627 = vtanh.f32 %v1252_v31  ;;  %v730_v35 = vadd.f32 %v4288_v3, %v729_v34  ;;  %v3070_v36 = vpop.f32.mrb[51].mxu0  ;;  %3228 = vmatmul.mubr.msk.f32.gmra.mrb[156].mxu0 %vm156_vm0, %v100_v29  ;;  %v106_v34 = vld [vmem:[%s5366_s0 + $0x2a0] sm:$0xff] }
 0x144   :  { %v1624_v38 = vadd.f32 0.5, %v1499_v33  ;;  %3230 = vmatprep.mubr.msk.f32.mxu0 %vm3873_vm2, %v5372_v4 }
 0x145   :  { %v3624_v0 = vpop.eup %3623  ;;  %v1253_v39 = vmul.f32 0.5, %v730_v35 }
 0x146   :  { %v3384_v8 = vpack.c.bf16 %v1624_v38, %v1623_v37  ;;  %v734_v42 = vpop.f32.mrb[52].mxu0  ;;  %v1500_v47 = vmul.f32 0.5, %v3624_v0 }
 0x147   :  { %3629 = vtanh.f32 %v1253_v39  ;;  %v735_v43 = vadd.f32 %v4288_v3, %v734_v42  ;;  %v3073_v46 = vpop.f32.mrb[53].mxu0  ;;  %3231 = vmatmul.mubr.msk.f32.gmra.mrb[158].mxu0 %vm156_vm0, %v101_v63 }
 0x148   :  { %3386 = vmatprep.subr.msk.bf16.mxu1 %vm4634_vm4, %v3384_v8  ;;  %3233 = vmatprep.mubr.msk.f32.mxu0 %vm3873_vm2, %v5372_v4  ;;  %v1625_v5 = vadd.f32 0.5, %v1500_v47 }
 0x149   :  { %v3626_v53 = vpop.eup %3625  ;;  %v1254_v55 = vmul.f32 0.5, %v735_v43  ;;  %3389 = vmatpush3.bf16.xpose.msk.msra.mxu1 %vm4634_vm4, %v3387_v27 }
 0x14a   :  { %v1501_v56 = vmul.f32 0.5, %v3626_v53  ;;  %v739_v58 = vpop.f32.mrb[54].mxu0  ;;  %v108_v53 = vld [vmem:[%s5366_s0 + $0x2b0] sm:$0xff] }
 0x14b   :  { %3631 = vtanh.f32 %v1254_v55  ;;  %v740_v59 = vadd.f32 %v4288_v3, %v739_v58  ;;  %v3076_v61 = vpop.f32.mrb[55].mxu0  ;;  %3234 = vmatmul.mubr.msk.f32.gmra.mrb[160].mxu0 %vm156_vm0, %v102_v49 }
 0x14c   :  { %v1626_v6 = vadd.f32 0.5, %v1501_v56  ;;  %3236 = vmatprep.mubr.msk.f32.mxu0 %vm3873_vm2, %v5372_v4 }
 0x14d   :  { %v3628_v22 = vpop.eup %3627  ;;  %v1255_v7 = vmul.f32 0.5, %v740_v59 }
 0x14e   :  { %v3390_v27 = vpack.c.bf16 %v1626_v6, %v1625_v5  ;;  %v744_v9 = vpop.f32.mrb[56].mxu0  ;;  %v1502_v13 = vmul.f32 0.5, %v3628_v22 }
 0x14f   :  { %3633 = vtanh.f32 %v1255_v7  ;;  %v745_v11 = vadd.f32 %v4288_v3, %v744_v9  ;;  %v3079_v12 = vpop.f32.mrb[57].mxu0  ;;  %3237 = vmatmul.mubr.msk.f32.gmra.mrb[162].mxu0 %vm156_vm0, %v103_v21 }
 0x150   :  { %3392 = vmatprep.subr.msk.bf16.mxu1 %vm4634_vm4, %v3390_v27  ;;  %3239 = vmatprep.mubr.msk.f32.mxu0 %vm3873_vm2, %v5372_v4  ;;  %v1627_v20 = vadd.f32 0.5, %v1502_v13  ;;  %v110_v12 = vld [vmem:[%s5366_s0 + $0x2c0] sm:$0xff] }
 0x151   :  { %v3630_v17 = vpop.eup %3629  ;;  %v1256_v44 = vmul.f32 0.5, %v745_v11  ;;  %3395 = vmatpush3.bf16.xpose.msk.msra.mxu1 %vm4634_vm4, %v3393_v48 }
 0x152   :  { %v1503_v45 = vmul.f32 0.5, %v3630_v17  ;;  %v749_v50 = vpop.f32.mrb[58].mxu0 }
 0x153   :  { %3635 = vtanh.f32 %v1256_v44  ;;  %v750_v18 = vadd.f32 %v4288_v3, %v749_v50  ;;  %v3082_v19 = vpop.f32.mrb[59].mxu0  ;;  %3240 = vmatmul.mubr.msk.f32.gmra.mrb[164].mxu0 %vm156_vm0, %v104_v14 }
 0x154   :  { %v1628_v24 = vadd.f32 0.5, %v1503_v45  ;;  %3242 = vmatprep.mubr.msk.f32.mxu0 %vm3873_vm2, %v5372_v4 }
 0x155   :  { %v3632_v41 = vpop.eup %3631  ;;  %v1257_v28 = vmul.f32 0.5, %v750_v18 }
 0x156   :  { %v3396_v48 = vpack.c.bf16 %v1628_v24, %v1627_v20  ;;  %v754_v29 = vpop.f32.mrb[60].mxu0  ;;  %v1504_v33 = vmul.f32 0.5, %v3632_v41 }
 0x157   :  { %3637 = vtanh.f32 %v1257_v28  ;;  %v755_v30 = vadd.f32 %v4288_v3, %v754_v29  ;;  %v3085_v31 = vpop.f32.mrb[61].mxu0  ;;  %3243 = vmatmul.mubr.msk.f32.gmra.mrb[166].mxu0 %vm156_vm0, %v105_v40 }
 0x158   :  { %3398 = vmatprep.subr.msk.bf16.mxu1 %vm4634_vm4, %v3396_v48  ;;  %3245 = vmatprep.mubr.msk.f32.mxu0 %vm3873_vm2, %v5372_v4  ;;  %v1629_v39 = vadd.f32 0.5, %v1504_v33  ;;  %v112_v48 = vld [vmem:[%s5366_s0 + $0x2d0] sm:$0xff] }
 0x159   :  { %v3634_v35 = vpop.eup %3633  ;;  %v1258_v36 = vmul.f32 0.5, %v755_v30  ;;  %3401 = vmatpush3.bf16.xpose.msk.msra.mxu1 %vm4634_vm4, %v3399_v10 }
 0x15a   :  { %v1505_v37 = vmul.f32 0.5, %v3634_v35  ;;  %v759_v38 = vpop.f32.mrb[62].mxu0 }
 0x15b   :  { %3639 = vtanh.f32 %v1258_v36  ;;  %v760_v63 = vadd.f32 %v4288_v3, %v759_v38  ;;  %v3088_v0 = vpop.f32.mrb[63].mxu0  ;;  %3246 = vmatmul.mubr.msk.f32.gmra.mrb[168].mxu0 %vm156_vm0, %v106_v34 }
 0x15c   :  { %v1630_v8 = vadd.f32 0.5, %v1505_v37  ;;  %3248 = vmatprep.mubr.msk.f32.mxu0 %vm3873_vm2, %v5372_v4 }
 0x15d   :  { %v3636_v1 = vpop.eup %3635  ;;  %v1259_v42 = vmul.f32 0.5, %v760_v63  ;;  %v4823_v63 = vld [vmem:[%s5368_s2] ss:$0 sm:$0xff] }
 0x15e   :  { %v3402_v10 = vpack.c.bf16 %v1630_v8, %v1629_v39  ;;  %v764_v43 = vpop.f32.mrb[64].mxu0  ;;  %v1506_v49 = vmul.f32 0.5, %v3636_v1 }
 0x15f   :  { %3641 = vtanh.f32 %v1259_v42  ;;  %v765_v46 = vadd.f32 %v4288_v3, %v764_v43  ;;  %v3091_v47 = vpop.f32.mrb[65].mxu0  ;;  %3249 = vmatmul.mubr.msk.f32.gmra.mrb[170].mxu0 %vm156_vm0, %v107_v62  ;;  %v114_v62 = vld [vmem:[%s5366_s0 + $0x2e0] sm:$0xff] }
 0x160   :  { %3404 = vmatprep.subr.msk.bf16.mxu1 %vm4634_vm4, %v3402_v10  ;;  %3251 = vmatprep.mubr.msk.f32.mxu0 %vm3873_vm2, %v5372_v4  ;;  %v1631_v6 = vadd.f32 0.5, %v1506_v49 }
 0x161   :  { %v3638_v55 = vpop.eup %3637  ;;  %v1260_v56 = vmul.f32 0.5, %v765_v46  ;;  %3407 = vmatpush3.bf16.xpose.msk.msra.mxu1 %vm4634_vm4, %v3405_v32 }
 0x162   :  { %v1507_v58 = vmul.f32 0.5, %v3638_v55  ;;  %v769_v59 = vpop.f32.mrb[66].mxu0  ;;  %v115_v55 = vld [vmem:[%s5366_s0 + $0x2e8] sm:$0xff] }
 0x163   :  { %3643 = vtanh.f32 %v1260_v56  ;;  %v770_v61 = vadd.f32 %v4288_v3, %v769_v59  ;;  %v3094_v5 = vpop.f32.mrb[67].mxu0  ;;  %3252 = vmatmul.mubr.msk.f32.gmra.mrb[172].mxu0 %vm156_vm0, %v108_v53 }
 0x164   :  { %v1632_v21 = vadd.f32 0.5, %v1507_v58  ;;  %3254 = vmatprep.mubr.msk.f32.mxu0 %vm3873_vm2, %v5372_v4 }
 0x165   :  { %v3640_v26 = vpop.eup %3639  ;;  %v1261_v22 = vmul.f32 0.5, %v770_v61 }
 0x166   :  { %v3408_v32 = vpack.c.bf16 %v1632_v21, %v1631_v6  ;;  %v774_v7 = vpop.f32.mrb[68].mxu0  ;;  %v1508_v11 = vmul.f32 0.5, %v3640_v26 }
 0x167   :  { %3645 = vtanh.f32 %v1261_v22  ;;  %v775_v27 = vadd.f32 %v4288_v3, %v774_v7  ;;  %v3097_v9 = vpop.f32.mrb[69].mxu0  ;;  %3255 = vmatmul.mubr.msk.f32.gmra.mrb[174].mxu0 %vm156_vm0, %v109_v25 }
 0x168   :  { %3410 = vmatprep.subr.msk.bf16.mxu1 %vm4634_vm4, %v3408_v32  ;;  %3257 = vmatprep.mubr.msk.f32.mxu0 %vm3873_vm2, %v5372_v4  ;;  %v1633_v18 = vadd.f32 0.5, %v1508_v11 }
 0x169   :  { %v3642_v13 = vpop.eup %3641  ;;  %v1262_v14 = vmul.f32 0.5, %v775_v27  ;;  %3413 = vmatpush3.bf16.xpose.msk.msra.mxu1 %vm4634_vm4, %v3411_v57 }
 0x16a   :  { %v1509_v17 = vmul.f32 0.5, %v3642_v13  ;;  %v779_v44 = vpop.f32.mrb[70].mxu0 }
 0x16b   :  { %3647 = vtanh.f32 %v1262_v14  ;;  %v780_v45 = vadd.f32 %v4288_v3, %v779_v44  ;;  %v3100_v50 = vpop.f32.mrb[71].mxu0  ;;  %3258 = vmatmul.mubr.msk.f32.gmra.mrb[176].mxu0 %vm156_vm0, %v110_v12 }
 0x16c   :  { %v1634_v19 = vadd.f32 0.5, %v1509_v17  ;;  %3260 = vmatprep.mubr.msk.f32.mxu0 %vm3873_vm2, %v5372_v4 }
 0x16d   :  { %v3644_v52 = vpop.eup %3643  ;;  %v1263_v20 = vmul.f32 0.5, %v780_v45 }
 0x16e   :  { %v3414_v57 = vpack.c.bf16 %v1634_v19, %v1633_v18  ;;  %v784_v24 = vpop.f32.mrb[72].mxu0  ;;  %v1510_v28 = vmul.f32 0.5, %v3644_v52 }
 0x16f   :  { %3649 = vtanh.f32 %v1263_v20  ;;  %v785_v40 = vadd.f32 %v4288_v3, %v784_v24  ;;  %v3103_v41 = vpop.f32.mrb[73].mxu0  ;;  %3261 = vmatmul.mubr.msk.f32.gmra.mrb[178].mxu0 %vm156_vm0, %v111_v51 }
 0x170   :  { %3416 = vmatprep.subr.msk.bf16.mxu1 %vm4634_vm4, %v3414_v57  ;;  %3263 = vmatprep.mubr.msk.f32.mxu0 %vm3873_vm2, %v5372_v4  ;;  %v4809_v36 = vadd.f32 0.5, %v1510_v28 }
 0x171   :  { %v3646_v29 = vpop.eup %3645  ;;  %v1264_v30 = vmul.f32 0.5, %v785_v40  ;;  %3419 = vmatpush3.bf16.xpose.msk.msra.mxu1 %vm4634_vm4, %v3417_v23 }
 0x172   :  { %v1511_v31 = vmul.f32 0.5, %v3646_v29  ;;  %v789_v33 = vpop.f32.mrb[74].mxu0 }
 0x173   :  { %3651 = vtanh.f32 %v1264_v30  ;;  %v790_v34 = vadd.f32 %v4288_v3, %v789_v33  ;;  %v3106_v35 = vpop.f32.mrb[75].mxu0  ;;  %3264 = vmatmul.mubr.msk.f32.gmra.mrb[180].mxu0 %vm156_vm0, %v112_v48 }
 0x174   :  { %v4811_v37 = vadd.f32 0.5, %v1511_v31  ;;  %3266 = vmatprep.mubr.msk.f32.mxu0 %vm3873_vm2, %v5372_v4 }
 0x175   :  { %v3648_v16 = vpop.eup %3647  ;;  %v1265_v23 = vmul.f32 0.5, %v790_v34 }
 0x176   :  { %v3423_v38 = vpack.c.bf16 %v4811_v37, %v4809_v36  ;;  %v794_v3 = vpop.f32.mrb[76].mxu0  ;;  %v1512_v8 = vmul.f32 0.5, %v3648_v16 }
 0x177   :  { %3653 = vtanh.f32 %v1265_v23  ;;  %v795_v0 = vadd.f32 %v4823_v63, %v794_v3  ;;  %v3109_v39 = vpop.f32.mrb[77].mxu0  ;;  %3267 = vmatmul.mubr.msk.f32.gmra.mrb[182].mxu0 %vm156_vm0, %v113_v15 }
 0x178   :  { %3269 = vmatprep.mubr.msk.f32.mxu0 %vm3873_vm2, %v5372_v4  ;;  %2920 = vmatmul.mubr.msk.f32.vlgmr.msra.gmra.mrb[62].mxu1 %vm1731_vm3, %v4644_v60  ;;  %v4838_v49 = vadd.f32 0.5, %v1512_v8 }
 0x179   :  { %v3650_v1 = vpop.eup %3649  ;;  %v1266_v42 = vmul.f32 0.5, %v795_v0  ;;  %2953 = vmatprep.mubr.msk.f32.mxu1 %vm1731_vm3, %v4644_v60 }
 0x17a   :  { %v1513_v10 = vmul.f32 0.5, %v3650_v1  ;;  %v799_v43 = vpop.f32.mrb[78].mxu0 }
 0x17b   :  { %3655 = vtanh.f32 %v1266_v42  ;;  %v800_v46 = vadd.f32 %v4823_v63, %v799_v43  ;;  %v3112_v47 = vpop.f32.mrb[79].mxu0  ;;  %3270 = vmatmul.mubr.msk.f32.gmra.mrb[184].mxu0 %vm156_vm0, %v114_v62 }
 0x17c   :  { %v4840_v53 = vadd.f32 0.5, %v1513_v10  ;;  %3272 = vmatprep.mubr.msk.f32.mxu0 %vm3873_vm2, %v5372_v4 }
 0x17d   :  { %v3652_v60 = vpop.eup %3651  ;;  %v1267_v56 = vmul.f32 0.5, %v800_v46 }
 0x17e   :  { %v3429_v58 = vpack.c.bf16 %v4840_v53, %v4838_v49  ;;  %v804_v59 = vpop.f32.mrb[80].mxu0  ;;  %v1514_v6 = vmul.f32 0.5, %v3652_v60 }
 0x17f   :  { %3657 = vtanh.f32 %v1267_v56  ;;  %v805_v61 = vadd.f32 %v4823_v63, %v804_v59  ;;  %v3115_v5 = vpop.f32.mrb[81].mxu0  ;;  %3273 = vmatmul.mubr.msk.f32.gmra.mrb[186].mxu0 %vm156_vm0, %v115_v55 }
 0x180   :  { %v4852_v27 = vadd.f32 0.5, %v1514_v6 }
 0x181   :  { %v3654_v21 = vpop.eup %3653  ;;  %v1268_v25 = vmul.f32 0.5, %v805_v61 }
 0x182   :  { %v1515_v26 = vmul.f32 0.5, %v3654_v21  ;;  %v809_v22 = vpop.f32.mrb[82].mxu0 }
 0x183   :  { %3659 = vtanh.f32 %v1268_v25  ;;  %v810_v32 = vadd.f32 %v4823_v63, %v809_v22  ;;  %v3118_v7 = vpop.f32.mrb[83].mxu0 }
 0x184   :  { %v4854_v9 = vadd.f32 0.5, %v1515_v26 }
 0x185   :  { %v3656_v11 = vpop.eup %3655  ;;  %v1269_v12 = vmul.f32 0.5, %v810_v32 }
 0x186   :  { %v3435_v13 = vpack.c.bf16 %v4854_v9, %v4852_v27  ;;  %v814_v14 = vpop.f32.mrb[84].mxu0  ;;  %v1516_v45 = vmul.f32 0.5, %v3656_v11 }
 0x187   :  { %3661 = vtanh.f32 %v1269_v12  ;;  %v815_v17 = vadd.f32 %v4823_v63, %v814_v14  ;;  %v3121_v44 = vpop.f32.mrb[85].mxu0 }
 0x188   :  { %v4860_v57 = vadd.f32 0.5, %v1516_v45 }
 0x189   :  { %v3658_v50 = vpop.eup %3657  ;;  %v1270_v18 = vmul.f32 0.5, %v815_v17 }
 0x18a   :  { %v1517_v19 = vmul.f32 0.5, %v3658_v50  ;;  %v819_v51 = vpop.f32.mrb[86].mxu0 }
 0x18b   :  { %3663 = vtanh.f32 %v1270_v18  ;;  %v820_v52 = vadd.f32 %v4823_v63, %v819_v51  ;;  %v3124_v20 = vpop.f32.mrb[87].mxu0 }
 0x18c   :  { %v4862_v24 = vadd.f32 0.5, %v1517_v19 }
 0x18d   :  { %v3660_v40 = vpop.eup %3659  ;;  %v1271_v41 = vmul.f32 0.5, %v820_v52 }
 0x18e   :  { %v3441_v28 = vpack.c.bf16 %v4862_v24, %v4860_v57  ;;  %v824_v48 = vpop.f32.mrb[88].mxu0  ;;  %v1518_v31 = vmul.f32 0.5, %v3660_v40 }
 0x18f   :  { %3665 = vtanh.f32 %v1271_v41  ;;  %v825_v29 = vadd.f32 %v4823_v63, %v824_v48  ;;  %v3127_v30 = vpop.f32.mrb[89].mxu0 }
 0x190   :  { %v4868_v3 = vadd.f32 0.5, %v1518_v31 }
 0x191   :  { %v3662_v33 = vpop.eup %3661  ;;  %v1272_v34 = vmul.f32 0.5, %v825_v29 }
 0x192   :  { %v1519_v35 = vmul.f32 0.5, %v3662_v33  ;;  %v829_v15 = vpop.f32.mrb[90].mxu0 }
 0x193   :  { %3667 = vtanh.f32 %v1272_v34  ;;  %v830_v16 = vadd.f32 %v4823_v63, %v829_v15  ;;  %v3130_v23 = vpop.f32.mrb[91].mxu0 }
 0x194   :  { %v4870_v0 = vadd.f32 0.5, %v1519_v35 }
 0x195   :  { %v3664_v39 = vpop.eup %3663  ;;  %v1273_v8 = vmul.f32 0.5, %v830_v16 }
 0x196   :  { %v3447_v62 = vpack.c.bf16 %v4870_v0, %v4868_v3  ;;  %v834_v1 = vpop.f32.mrb[92].mxu0  ;;  %v1520_v43 = vmul.f32 0.5, %v3664_v39 }
 0x197   :  { %3669 = vtanh.f32 %v1273_v8  ;;  %v835_v42 = vadd.f32 %v4823_v63, %v834_v1  ;;  %v3133_v10 = vpop.f32.mrb[93].mxu0 }
 0x198   :  { %v4876_v61 = vadd.f32 0.5, %v1520_v43 }
 0x199   :  { %v3666_v46 = vpop.eup %3665  ;;  %v1274_v47 = vmul.f32 0.5, %v835_v42 }
 0x19a   :  { %v1521_v55 = vmul.f32 0.5, %v3666_v46  ;;  %v839_v60 = vpop.f32.mrb[94].mxu0 }
 0x19b   :  { %3671 = vtanh.f32 %v1274_v47  ;;  %v840_v56 = vadd.f32 %v4823_v63, %v839_v60  ;;  %v3136_v59 = vpop.f32.mrb[95].mxu0 }
 0x19c   :  { %v4878_v5 = vadd.f32 0.5, %v1521_v55 }
 0x19d   :  { %v3668_v6 = vpop.eup %3667  ;;  %v1275_v21 = vmul.f32 0.5, %v840_v56 }
 0x19e   :  { %v3453_v25 = vpack.c.bf16 %v4878_v5, %v4876_v61  ;;  %v844_v26 = vpop.f32.mrb[96].mxu0  ;;  %v1522_v7 = vmul.f32 0.5, %v3668_v6 }
 0x19f   :  { %3673 = vtanh.f32 %v1275_v21  ;;  %v845_v22 = vadd.f32 %v4823_v63, %v844_v26  ;;  %v3139_v32 = vpop.f32.mrb[97].mxu0 }
 0x1a0   :  { %v4884_v50 = vadd.f32 0.5, %v1522_v7 }
 0x1a1   :  { %v3670_v11 = vpop.eup %3669  ;;  %v1276_v12 = vmul.f32 0.5, %v845_v22 }
 0x1a2   :  { %v1523_v14 = vmul.f32 0.5, %v3670_v11  ;;  %v849_v17 = vpop.f32.mrb[98].mxu0 }
 0x1a3   :  { %3675 = vtanh.f32 %v1276_v12  ;;  %v850_v44 = vadd.f32 %v4823_v63, %v849_v17  ;;  %v3142_v45 = vpop.f32.mrb[99].mxu0 }
 0x1a4   :  { %v4886_v18 = vadd.f32 0.5, %v1523_v14 }
 0x1a5   :  { %v3672_v19 = vpop.eup %3671  ;;  %v1277_v51 = vmul.f32 0.5, %v850_v44 }
 0x1a6   :  { %v3459_v52 = vpack.c.bf16 %v4886_v18, %v4884_v50  ;;  %v854_v20 = vpop.f32.mrb[100].mxu0  ;;  %v1524_v48 = vmul.f32 0.5, %v3672_v19 }
 0x1a7   :  { %3677 = vtanh.f32 %v1277_v51  ;;  %v855_v40 = vadd.f32 %v4823_v63, %v854_v20  ;;  %v3145_v41 = vpop.f32.mrb[101].mxu0 }
 0x1a8   :  { %v4892_v15 = vadd.f32 0.5, %v1524_v48 }
 0x1a9   :  { %v3674_v29 = vpop.eup %3673  ;;  %v1278_v30 = vmul.f32 0.5, %v855_v40 }
 0x1aa   :  { %v1525_v31 = vmul.f32 0.5, %v3674_v29  ;;  %v859_v33 = vpop.f32.mrb[102].mxu0 }
 0x1ab   :  { %3679 = vtanh.f32 %v1278_v30  ;;  %v860_v34 = vadd.f32 %v4823_v63, %v859_v33  ;;  %v3148_v35 = vpop.f32.mrb[103].mxu0 }
 0x1ac   :  { %v4894_v16 = vadd.f32 0.5, %v1525_v31 }
 0x1ad   :  { %v3676_v23 = vpop.eup %3675  ;;  %v1279_v39 = vmul.f32 0.5, %v860_v34 }
 0x1ae   :  { %v3465_v8 = vpack.c.bf16 %v4894_v16, %v4892_v15  ;;  %v864_v1 = vpop.f32.mrb[104].mxu0  ;;  %v1526_v43 = vmul.f32 0.5, %v3676_v23 }
 0x1af   :  { %3681 = vtanh.f32 %v1279_v39  ;;  %v865_v42 = vadd.f32 %v4823_v63, %v864_v1  ;;  %v3151_v10 = vpop.f32.mrb[105].mxu0 }
 0x1b0   :  { %v1651_v6 = vadd.f32 0.5, %v1526_v43 }
 0x1b1   :  { %v3678_v46 = vpop.eup %3677  ;;  %v1280_v47 = vmul.f32 0.5, %v865_v42 }
 0x1b2   :  { %v1527_v55 = vmul.f32 0.5, %v3678_v46  ;;  %v869_v60 = vpop.f32.mrb[106].mxu0 }
 0x1b3   :  { %3683 = vtanh.f32 %v1280_v47  ;;  %v870_v56 = vadd.f32 %v4823_v63, %v869_v60  ;;  %v3154_v59 = vpop.f32.mrb[107].mxu0 }
 0x1b4   :  { %v1652_v21 = vadd.f32 0.5, %v1527_v55 }
 0x1b5   :  { %v3680_v26 = vpop.eup %3679  ;;  %v1281_v22 = vmul.f32 0.5, %v870_v56 }
 0x1b6   :  { %v3420_v32 = vpack.c.bf16 %v1652_v21, %v1651_v6  ;;  %v874_v7 = vpop.f32.mrb[108].mxu0  ;;  %v1528_v14 = vmul.f32 0.5, %v3680_v26 }
 0x1b7   :  { %3685 = vtanh.f32 %v1281_v22  ;;  %v875_v11 = vadd.f32 %v4823_v63, %v874_v7  ;;  %v3157_v12 = vpop.f32.mrb[109].mxu0 }
 0x1b8   :  { %3422 = vmatprep.subr.msk.bf16.mxu1 %vm4634_vm4, %v3420_v32  ;;  %v1653_v40 = vadd.f32 0.5, %v1528_v14 }
 0x1b9   :  { %v3682_v17 = vpop.eup %3681  ;;  %v1282_v44 = vmul.f32 0.5, %v875_v11  ;;  %3425 = vmatpush3.bf16.xpose.msk.msra.mxu1 %vm4634_vm4, %v3423_v38 }
 0x1ba   :  { %v1529_v45 = vmul.f32 0.5, %v3682_v17  ;;  %v879_v19 = vpop.f32.mrb[110].mxu0  ;;  %v1074_v17 = vpop.f32.mrb[0].mxu1 }
 0x1bb   :  { %3687 = vtanh.f32 %v1282_v44  ;;  %v880_v51 = vadd.f32 %v4823_v63, %v879_v19  ;;  %v3160_v20 = vpop.f32.mrb[111].mxu0  ;;  %v3277_v9 = vpop.f32.mrb[1].mxu1 }
 0x1bc   :  { %v1654_v41 = vadd.f32 0.5, %v1529_v45  ;;  %v1075_v20 = vadd.f32 %v4823_v63, %v1074_v17 }
 0x1bd   :  { %v3684_v48 = vpop.eup %3683  ;;  %v1283_v29 = vmul.f32 0.5, %v880_v51 }
 0x1be   :  { %v3426_v30 = vpack.c.bf16 %v1654_v41, %v1653_v40  ;;  %v884_v31 = vpop.f32.mrb[112].mxu0  ;;  %v1530_v36 = vmul.f32 0.5, %v3684_v48 }
 0x1bf   :  { %3689 = vtanh.f32 %v1283_v29  ;;  %v885_v33 = vadd.f32 %v4823_v63, %v884_v31  ;;  %v3163_v34 = vpop.f32.mrb[113].mxu0 }
 0x1c0   :  { %3428 = vmatprep.subr.msk.bf16.mxu1 %vm4634_vm4, %v3426_v30  ;;  %v1655_v42 = vadd.f32 0.5, %v1530_v36 }
 0x1c1   :  { %v3686_v37 = vpop.eup %3685  ;;  %v1284_v38 = vmul.f32 0.5, %v885_v33  ;;  %3431 = vmatpush3.bf16.xpose.msk.msra.mxu1 %vm4634_vm4, %v3429_v58  ;;  %v1322_v33 = vmul.f32 0.5, %v1075_v20 }
 0x1c2   :  { %v1531_v35 = vmul.f32 0.5, %v3686_v37  ;;  %v889_v23 = vpop.f32.mrb[114].mxu0 }
 0x1c3   :  { %3691 = vtanh.f32 %v1284_v38  ;;  %v890_v39 = vadd.f32 %v4823_v63, %v889_v23  ;;  %v3166_v1 = vpop.f32.mrb[115].mxu0 }
 0x1c4   :  { %v1656_v10 = vadd.f32 0.5, %v1531_v35 }
 0x1c5   :  { %v3688_v43 = vpop.eup %3687  ;;  %v1285_v46 = vmul.f32 0.5, %v890_v39 }
 0x1c6   :  { %v3432_v47 = vpack.c.bf16 %v1656_v10, %v1655_v42  ;;  %v894_v55 = vpop.f32.mrb[116].mxu0  ;;  %v1532_v49 = vmul.f32 0.5, %v3688_v43 }
 0x1c7   :  { %3693 = vtanh.f32 %v1285_v46  ;;  %v895_v60 = vadd.f32 %v4823_v63, %v894_v55  ;;  %v3169_v56 = vpop.f32.mrb[117].mxu0 }
 0x1c8   :  { %3434 = vmatprep.subr.msk.bf16.mxu1 %vm4634_vm4, %v3432_v47  ;;  %v1657_v22 = vadd.f32 0.5, %v1532_v49 }
 0x1c9   :  { %v3690_v53 = vpop.eup %3689  ;;  %v1286_v58 = vmul.f32 0.5, %v895_v60  ;;  %3437 = vmatpush3.bf16.xpose.msk.msra.mxu1 %vm4634_vm4, %v3435_v13  ;;  %v1079_v13 = vpop.f32.mrb[2].mxu1 }
 0x1ca   :  { %v1533_v59 = vmul.f32 0.5, %v3690_v53  ;;  %v899_v6 = vpop.f32.mrb[118].mxu0  ;;  %v1080_v40 = vadd.f32 %v4823_v63, %v1079_v13  ;;  %v3280_v41 = vpop.f32.mrb[3].mxu1 }
 0x1cb   :  { %3695 = vtanh.f32 %v1286_v58  ;;  %v900_v21 = vadd.f32 %v4823_v63, %v899_v6  ;;  %v3172_v26 = vpop.f32.mrb[119].mxu0  ;;  %v1084_v35 = vpop.f32.mrb[4].mxu1 }
 0x1cc   :  { %v1658_v32 = vadd.f32 0.5, %v1533_v59  ;;  %v1323_v34 = vmul.f32 0.5, %v1080_v40  ;;  %v3283_v1 = vpop.f32.mrb[5].mxu1  ;;  %v1085_v47 = vadd.f32 %v4823_v63, %v1084_v35 }
 0x1cd   :  { %v3692_v7 = vpop.eup %3691  ;;  %v1287_v11 = vmul.f32 0.5, %v900_v21  ;;  %v1089_v10 = vpop.f32.mrb[6].mxu1 }
 0x1ce   :  { %v3438_v12 = vpack.c.bf16 %v1658_v32, %v1657_v22  ;;  %v904_v14 = vpop.f32.mrb[120].mxu0  ;;  %v1534_v45 = vmul.f32 0.5, %v3692_v7  ;;  %v1090_v55 = vadd.f32 %v4823_v63, %v1089_v10  ;;  %v3286_v60 = vpop.f32.mrb[7].mxu1  ;;  %v1324_v59 = vmul.f32 0.5, %v1085_v47 }
 0x1cf   :  { %3697 = vtanh.f32 %v1287_v11  ;;  %v905_v44 = vadd.f32 %v4823_v63, %v904_v14  ;;  %v3175_v27 = vpop.f32.mrb[121].mxu0  ;;  %v1094_v32 = vpop.f32.mrb[8].mxu1 }
 0x1d0   :  { %3440 = vmatprep.subr.msk.bf16.mxu1 %vm4634_vm4, %v3438_v12  ;;  %v1659_v36 = vadd.f32 0.5, %v1534_v45  ;;  %v1325_v6 = vmul.f32 0.5, %v1090_v55  ;;  %v3289_v14 = vpop.f32.mrb[9].mxu1 }
 0x1d1   :  { %v3694_v19 = vpop.eup %3693  ;;  %v1288_v51 = vmul.f32 0.5, %v905_v44  ;;  %3443 = vmatpush3.bf16.xpose.msk.msra.mxu1 %vm4634_vm4, %v3441_v28  ;;  %v1099_v9 = vpop.f32.mrb[10].mxu1 }
 0x1d2   :  { %v1535_v48 = vmul.f32 0.5, %v3694_v19  ;;  %v909_v29 = vpop.f32.mrb[122].mxu0  ;;  %v1100_v20 = vadd.f32 %v4823_v63, %v1099_v9  ;;  %v3292_v40 = vpop.f32.mrb[11].mxu1 }
 0x1d3   :  { %3699 = vtanh.f32 %v1288_v51  ;;  %v910_v30 = vadd.f32 %v4823_v63, %v909_v29  ;;  %v3178_v31 = vpop.f32.mrb[123].mxu0  ;;  %v1095_v51 = vadd.f32 %v4823_v63, %v1094_v32 }
 0x1d4   :  { %v1660_v37 = vadd.f32 0.5, %v1535_v48  ;;  %3701 = vtanh.f32 %v1322_v33 }
 0x1d5   :  { %v3696_v38 = vpop.eup %3695  ;;  %v1289_v57 = vmul.f32 0.5, %v910_v30  ;;  %3703 = vtanh.f32 %v1323_v34  ;;  %v1326_v61 = vmul.f32 0.5, %v1095_v51 }
 0x1d6   :  { %v3444_v24 = vpack.c.bf16 %v1660_v37, %v1659_v36  ;;  %v914_v28 = vpop.f32.mrb[124].mxu0  ;;  %v1536_v42 = vmul.f32 0.5, %v3696_v38 }
 0x1d7   :  { %3705 = vtanh.f32 %v1289_v57  ;;  %v915_v23 = vadd.f32 %v4823_v63, %v914_v28  ;;  %v3181_v39 = vpop.f32.mrb[125].mxu0  ;;  %v1104_v28 = vpop.f32.mrb[12].mxu1 }
 0x1d8   :  { %3446 = vmatprep.subr.msk.bf16.mxu1 %vm4634_vm4, %v3444_v24  ;;  %v1661_v21 = vadd.f32 0.5, %v1536_v42  ;;  %v1105_v1 = vadd.f32 %v4823_v63, %v1104_v28  ;;  %v3295_v42 = vpop.f32.mrb[13].mxu1 }
 0x1d9   :  { %v3698_v43 = vpop.eup %3697  ;;  %v1290_v46 = vmul.f32 0.5, %v915_v23  ;;  %3449 = vmatpush3.bf16.xpose.msk.msra.mxu1 %vm4634_vm4, %v3447_v62  ;;  %v1109_v47 = vpop.f32.mrb[14].mxu1 }
 0x1da   :  { %v1537_v56 = vmul.f32 0.5, %v3698_v43  ;;  %v919_v49 = vpop.f32.mrb[126].mxu0 }
 0x1db   :  { %3707 = vtanh.f32 %v1290_v46  ;;  %v920_v53 = vadd.f32 %v4823_v63, %v919_v49  ;;  %v3184_v58 = vpop.f32.mrb[127].mxu0  ;;  %v1328_v49 = vmul.f32 0.5, %v1105_v1 }
 0x1dc   :  { %v1662_v26 = vadd.f32 0.5, %v1537_v56  ;;  %3709 = vtanh.f32 %v1324_v59  ;;  %v3298_v58 = vpop.f32.mrb[15].mxu1 }
 0x1dd   :  { %v3700_v22 = vpop.eup %3699  ;;  %v1291_v3 = vmul.f32 0.5, %v920_v53  ;;  %3711 = vtanh.f32 %v1325_v6  ;;  %v1110_v53 = vadd.f32 %v4823_v63, %v1109_v47 }
 0x1de   :  { %v3450_v0 = vpack.c.bf16 %v1662_v26, %v1661_v21  ;;  %v924_v62 = vpop.f32.mrb[128].mxu0  ;;  %v3702_v7 = vpop.eup %3701  ;;  %v1538_v44 = vmul.f32 0.5, %v3700_v22 }
 0x1df   :  { %3713 = vtanh.f32 %v1291_v3  ;;  %v925_v11 = vadd.f32 %v4823_v63, %v924_v62  ;;  %v3187_v12 = vpop.f32.mrb[129].mxu0  ;;  %v3704_v17 = vpop.eup %3703  ;;  %v1572_v27 = vmul.f32 0.5, %v3702_v7  ;;  %v1329_v50 = vmul.f32 0.5, %v1110_v53 }
 0x1e0   :  { %3452 = vmatprep.subr.msk.bf16.mxu1 %vm4634_vm4, %v3450_v0  ;;  %v1573_v19 = vmul.f32 0.5, %v3704_v17  ;;  %v1663_v5 = vadd.f32 0.5, %v1538_v44  ;;  %v1114_v26 = vpop.f32.mrb[16].mxu1 }
 0x1e1   :  { %v3706_v45 = vpop.eup %3705  ;;  %v1292_v13 = vmul.f32 0.5, %v925_v11  ;;  %3455 = vmatpush3.bf16.xpose.msk.msra.mxu1 %vm4634_vm4, %v3453_v25  ;;  %v4959_v29 = vadd.f32 0.5, %v1572_v27  ;;  %v1327_v25 = vmul.f32 0.5, %v1100_v20  ;;  %v3301_v18 = vpop.f32.mrb[17].mxu1  ;;  %v1115_v32 = vadd.f32 %v4823_v63, %v1114_v26 }
 0x1e2   :  { %v1539_v41 = vmul.f32 0.5, %v3706_v45  ;;  %v929_v48 = vpop.f32.mrb[130].mxu0  ;;  %v4962_v33 = vadd.f32 0.5, %v1573_v19  ;;  %v1119_v7 = vpop.f32.mrb[18].mxu1 }
 0x1e3   :  { %3715 = vtanh.f32 %v1292_v13  ;;  %v930_v30 = vadd.f32 %v4823_v63, %v929_v48  ;;  %v3190_v31 = vpop.f32.mrb[131].mxu0  ;;  %v1120_v17 = vadd.f32 %v4823_v63, %v1119_v7  ;;  %v3304_v44 = vpop.f32.mrb[19].mxu1  ;;  %v1330_v45 = vmul.f32 0.5, %v1115_v32 }
 0x1e4   :  { %v1664_v34 = vadd.f32 0.5, %v1539_v41  ;;  %3717 = vtanh.f32 %v1326_v61 }
 0x1e5   :  { %v3708_v36 = vpop.eup %3707  ;;  %v1293_v37 = vmul.f32 0.5, %v930_v30  ;;  %3719 = vtanh.f32 %v1327_v25  ;;  %v1331_v20 = vmul.f32 0.5, %v1120_v17 }
 0x1e6   :  { %v3456_v57 = vpack.c.bf16 %v1664_v34, %v1663_v5  ;;  %v934_v24 = vpop.f32.mrb[132].mxu0  ;;  %v3710_v35 = vpop.eup %3709  ;;  %v1540_v43 = vmul.f32 0.5, %v3708_v36 }
 0x1e7   :  { %3721 = vtanh.f32 %v1293_v37  ;;  %v935_v23 = vadd.f32 %v4823_v63, %v934_v24  ;;  %v3193_v39 = vpop.f32.mrb[133].mxu0  ;;  %v3712_v10 = vpop.eup %3711  ;;  %v1574_v46 = vmul.f32 0.5, %v3710_v35 }
 0x1e8   :  { %3458 = vmatprep.subr.msk.bf16.mxu1 %vm4634_vm4, %v3456_v57  ;;  %v1575_v56 = vmul.f32 0.5, %v3712_v10  ;;  %v1665_v62 = vadd.f32 0.5, %v1540_v43  ;;  %v1124_v5 = vpop.f32.mrb[20].mxu1 }
 0x1e9   :  { %v3714_v55 = vpop.eup %3713  ;;  %v1294_v60 = vmul.f32 0.5, %v935_v23  ;;  %3461 = vmatpush3.bf16.xpose.msk.msra.mxu1 %vm4634_vm4, %v3459_v52  ;;  %v4976_v21 = vadd.f32 0.5, %v1574_v46  ;;  %v1125_v37 = vadd.f32 %v4823_v63, %v1124_v5  ;;  %v3307_v57 = vpop.f32.mrb[21].mxu1 }
 0x1ea   :  { %v1541_v59 = vmul.f32 0.5, %v3714_v55  ;;  %v939_v6 = vpop.f32.mrb[134].mxu0  ;;  %v4979_v0 = vadd.f32 0.5, %v1575_v56  ;;  %v1129_v15 = vpop.f32.mrb[22].mxu1 }
 0x1eb   :  { %3723 = vtanh.f32 %v1294_v60  ;;  %v940_v22 = vadd.f32 %v4823_v63, %v939_v6  ;;  %v3196_v3 = vpop.f32.mrb[135].mxu0  ;;  %v1332_v23 = vmul.f32 0.5, %v1125_v37  ;;  %v1130_v39 = vadd.f32 %v4823_v63, %v1129_v15  ;;  %v3310_v1 = vpop.f32.mrb[23].mxu1  ;;  %v5012_v6 = vld [vmem:[%s5369_s3] sm:$0x1] }
 0x1ec   :  { %v1666_v52 = vadd.f32 0.5, %v1541_v59  ;;  %3725 = vtanh.f32 %v1328_v49  ;;  %v1134_v18 = vpop.f32.mrb[24].mxu1 }
 0x1ed   :  { %v3716_v11 = vpop.eup %3715  ;;  %v1295_v12 = vmul.f32 0.5, %v940_v22  ;;  %3727 = vtanh.f32 %v1329_v50  ;;  %v1333_v60 = vmul.f32 0.5, %v1130_v39 }
 0x1ee   :  { %v3462_v27 = vpack.c.bf16 %v1666_v52, %v1665_v62  ;;  %v944_v9 = vpop.f32.mrb[136].mxu0  ;;  %v3718_v13 = vpop.eup %3717  ;;  %v1542_v41 = vmul.f32 0.5, %v3716_v11  ;;  %v1135_v11 = vadd.f32 %v4823_v63, %v1134_v18 }
 0x1ef   :  { %3729 = vtanh.f32 %v1295_v12  ;;  %v945_v19 = vadd.f32 %v4823_v63, %v944_v9  ;;  %v3199_v51 = vpop.f32.mrb[137].mxu0  ;;  %v3720_v40 = vpop.eup %3719  ;;  %v1576_v48 = vmul.f32 0.5, %v3718_v13 }
 0x1f0   :  { %3464 = vmatprep.subr.msk.bf16.mxu1 %vm4634_vm4, %v3462_v27  ;;  %3731 = vtanh.f32 %v1330_v45  ;;  %v1577_v61 = vmul.f32 0.5, %v3720_v40  ;;  %v4999_v16 = vadd.f32 0.5, %v1542_v41  ;;  %v3313_v12 = vpop.f32.mrb[25].mxu1  ;;  %v1334_v40 = vmul.f32 0.5, %v1135_v11 }
 0x1f1   :  { %v3722_v30 = vpop.eup %3721  ;;  %v1296_v31 = vmul.f32 0.5, %v945_v19  ;;  %3467 = vmatpush3.bf16.xpose.msk.msra.mxu1 %vm4634_vm4, %v3465_v8  ;;  %3733 = vtanh.f32 %v1331_v20  ;;  %v4993_v36 = vadd.f32 0.5, %v1576_v48  ;;  %v1139_v13 = vpop.f32.mrb[26].mxu1 }
 0x1f2   :  { %v1543_v34 = vmul.f32 0.5, %v3722_v30  ;;  %v949_v25 = vpop.f32.mrb[138].mxu0  ;;  %v4997_v35 = vadd.f32 0.5, %v1577_v61  ;;  %v3316_v41 = vpop.f32.mrb[27].mxu1  ;;  %v1140_v61 = vadd.f32 %v4823_v63, %v1139_v13 }
 0x1f3   :  { %3735 = vtanh.f32 %v1296_v31  ;;  %v950_v24 = vadd.f32 %v4823_v63, %v949_v25  ;;  %v3202_v28 = vpop.f32.mrb[139].mxu0 }
 0x1f4   :  { %v5001_v8 = vadd.f32 0.5, %v1543_v34  ;;  %3737 = vtanh.f32 %v1332_v23 }
 0x1f5   :  { %v3724_v42 = vpop.eup %3723  ;;  %v1297_v10 = vmul.f32 0.5, %v950_v24  ;;  %v1335_v24 = vmul.f32 0.5, %v1140_v61 }
 0x1f6   :  { %v3726_v46 = vpop.eup %3725  ;;  %v3471_v47 = vpack.c.bf16 %v5001_v8, %v4999_v16  ;;  %v954_v55 = vpop.f32.mrb[140].mxu0  ;;  %v1544_v49 = vmul.f32 0.5, %v3724_v42 }
 0x1f7   :  { %v3728_v56 = vpop.eup %3727  ;;  %3739 = vtanh.f32 %v1297_v10  ;;  %v955_v53 = vadd.f32 %v4823_v63, %v954_v55  ;;  %v3205_v58 = vpop.f32.mrb[141].mxu0  ;;  %v1578_v59 = vmul.f32 0.5, %v3726_v46 }
 0x1f8   :  { %2954 = vmatmul.mubr.msk.f32.vlgmr.msra.gmra.mrb[64].mxu1 %vm1731_vm3, %v5012_v6  ;;  %v1579_v26 = vmul.f32 0.5, %v3728_v56  ;;  %3741 = vtanh.f32 %v1333_v60  ;;  %v5023_v44 = vadd.f32 0.5, %v1544_v49  ;;  %v1144_v10 = vpop.f32.mrb[28].mxu1 }
 0x1f9   :  { %v3730_v22 = vpop.eup %3729  ;;  %v1298_v3 = vmul.f32 0.5, %v955_v53  ;;  %v5016_v50 = vadd.f32 0.5, %v1578_v59  ;;  %2987 = vmatprep.mubr.msk.f32.mxu1 %vm1731_vm3, %v5012_v6  ;;  %v1145_v56 = vadd.f32 %v4823_v63, %v1144_v10  ;;  %v3319_v49 = vpop.f32.mrb[29].mxu1 }
 0x1fa   :  { %v3732_v62 = vpop.eup %3731  ;;  %v1545_v52 = vmul.f32 0.5, %v3730_v22  ;;  %v959_v32 = vpop.f32.mrb[142].mxu0  ;;  %v5020_v7 = vadd.f32 0.5, %v1579_v26 }
 0x1fb   :  { %v3734_v17 = vpop.eup %3733  ;;  %3743 = vtanh.f32 %v1298_v3  ;;  %v960_v27 = vadd.f32 %v4823_v63, %v959_v32  ;;  %v3208_v9 = vpop.f32.mrb[143].mxu0  ;;  %v1580_v45 = vmul.f32 0.5, %v3732_v62  ;;  %v1336_v62 = vmul.f32 0.5, %v1145_v56 }
 0x1fc   :  { %v5026_v19 = vadd.f32 0.5, %v1545_v52  ;;  %v1581_v20 = vmul.f32 0.5, %v3734_v17  ;;  %3745 = vtanh.f32 %v1334_v40  ;;  %v1149_v22 = vpop.f32.mrb[30].mxu1 }
 0x1fd   :  { %v3736_v48 = vpop.eup %3735  ;;  %v1299_v30 = vmul.f32 0.5, %v960_v27  ;;  %v5030_v31 = vadd.f32 0.5, %v1580_v45  ;;  %v1150_v52 = vadd.f32 %v4823_v63, %v1149_v22  ;;  %v3322_v32 = vpop.f32.mrb[31].mxu1 }
 0x1fe   :  { %v964_v34 = vpop.f32.mrb[144].mxu0  ;;  %v5035_v25 = vadd.f32 0.5, %v1581_v20  ;;  %v3738_v28 = vpop.eup %3737  ;;  %v1546_v15 = vmul.f32 0.5, %v3736_v48 }
 0x1ff   :  { %3747 = vtanh.f32 %v1299_v30  ;;  %v965_v37 = vadd.f32 %v4823_v63, %v964_v34  ;;  %v3211_v57 = vpop.f32.mrb[145].mxu0  ;;  %v1582_v42 = vmul.f32 0.5, %v3738_v28  ;;  %v1337_v45 = vmul.f32 0.5, %v1150_v52 }
 0x200   :  { %3749 = vtanh.f32 %v1335_v24  ;;  %v5044_v3 = vadd.f32 0.5, %v1546_v15 }
 0x201   :  { %v3740_v39 = vpop.eup %3739  ;;  %v1300_v1 = vmul.f32 0.5, %v965_v37  ;;  %v5042_v59 = vadd.f32 0.5, %v1582_v42  ;;  %v1154_v37 = vpop.f32.mrb[32].mxu1 }
 0x202   :  { %v3742_v46 = vpop.eup %3741  ;;  %v1547_v55 = vmul.f32 0.5, %v3740_v39  ;;  %v969_v60 = vpop.f32.mrb[146].mxu0  ;;  %v1155_v28 = vadd.f32 %v4823_v63, %v1154_v37 }
 0x203   :  { %3751 = vtanh.f32 %v1300_v1  ;;  %v970_v53 = vadd.f32 %v4823_v63, %v969_v60  ;;  %v3214_v58 = vpop.f32.mrb[147].mxu0  ;;  %v1583_v26 = vmul.f32 0.5, %v3742_v46  ;;  %v3325_v15 = vpop.f32.mrb[33].mxu1 }
 0x204   :  { %v5046_v18 = vadd.f32 0.5, %v1547_v55  ;;  %3753 = vtanh.f32 %v1336_v62  ;;  %v1159_v55 = vpop.f32.mrb[34].mxu1  ;;  %v1338_v49 = vmul.f32 0.5, %v1155_v28 }
 0x205   :  { %v3744_v11 = vpop.eup %3743  ;;  %v1301_v12 = vmul.f32 0.5, %v970_v53  ;;  %v5049_v17 = vadd.f32 0.5, %v1583_v26  ;;  %v1160_v53 = vadd.f32 %v4823_v63, %v1159_v55  ;;  %v3328_v58 = vpop.f32.mrb[35].mxu1 }
 0x206   :  { %v974_v9 = vpop.f32.mrb[148].mxu0  ;;  %v1548_v13 = vmul.f32 0.5, %v3744_v11  ;;  %v3746_v48 = vpop.eup %3745 }
 0x207   :  { %3755 = vtanh.f32 %v1301_v12  ;;  %v975_v20 = vadd.f32 %v4823_v63, %v974_v9  ;;  %v3217_v40 = vpop.f32.mrb[149].mxu0  ;;  %v1584_v34 = vmul.f32 0.5, %v3746_v48  ;;  %v1339_v9 = vmul.f32 0.5, %v1160_v53 }
 0x208   :  { %3757 = vtanh.f32 %v1337_v45  ;;  %v5057_v1 = vadd.f32 0.5, %v1548_v13 }
 0x209   :  { %v3748_v30 = vpop.eup %3747  ;;  %v1302_v61 = vmul.f32 0.5, %v975_v20  ;;  %v5060_v46 = vadd.f32 0.5, %v1584_v34 }
 0x20a   :  { %v1549_v57 = vmul.f32 0.5, %v3748_v30  ;;  %v979_v24 = vpop.f32.mrb[150].mxu0  ;;  %v3750_v39 = vpop.eup %3749 }
 0x20b   :  { %3759 = vtanh.f32 %v1302_v61  ;;  %v980_v42 = vadd.f32 %v4823_v63, %v979_v24  ;;  %v3220_v10 = vpop.f32.mrb[151].mxu0  ;;  %v1585_v56 = vmul.f32 0.5, %v3750_v39  ;;  %v1164_v61 = vpop.f32.mrb[36].mxu1 }
 0x20c   :  { %v5062_v60 = vadd.f32 0.5, %v1549_v57  ;;  %3761 = vtanh.f32 %v1338_v49  ;;  %v1165_v24 = vadd.f32 %v4823_v63, %v1164_v61  ;;  %v3331_v28 = vpop.f32.mrb[37].mxu1 }
 0x20d   :  { %v3752_v26 = vpop.eup %3751  ;;  %v1303_v22 = vmul.f32 0.5, %v980_v42  ;;  %v5067_v32 = vadd.f32 0.5, %v1585_v56  ;;  %v1169_v55 = vpop.f32.mrb[38].mxu1 }
 0x20e   :  { %v984_v52 = vpop.f32.mrb[152].mxu0  ;;  %v3754_v45 = vpop.eup %3753  ;;  %v1550_v13 = vmul.f32 0.5, %v3752_v26  ;;  %v1340_v53 = vmul.f32 0.5, %v1165_v24  ;;  %v1170_v58 = vadd.f32 %v4823_v63, %v1169_v55 }
 0x20f   :  { %3763 = vtanh.f32 %v1303_v22  ;;  %v985_v11 = vadd.f32 %v4823_v63, %v984_v52  ;;  %v3223_v12 = vpop.f32.mrb[153].mxu0  ;;  %v1586_v30 = vmul.f32 0.5, %v3754_v45  ;;  %v3334_v26 = vpop.f32.mrb[39].mxu1 }
 0x210   :  { %3765 = vtanh.f32 %v1339_v9  ;;  %v5076_v56 = vadd.f32 0.5, %v1550_v13  ;;  %v1341_v45 = vmul.f32 0.5, %v1170_v58  ;;  %v5088_v13 = vld [vmem:[%s5368_s2] ss:$0 sm:$0xff]  ;;  %v1174_v24 = vpop.f32.mrb[40].mxu1 }
 0x211   :  { %v3756_v40 = vpop.eup %3755  ;;  %v1304_v48 = vmul.f32 0.5, %v985_v11  ;;  %v5074_v42 = vadd.f32 0.5, %v1586_v30 }
 0x212   :  { %v3758_v34 = vpop.eup %3757  ;;  %v1551_v37 = vmul.f32 0.5, %v3756_v40  ;;  %v989_v57 = vpop.f32.mrb[154].mxu0 }
 0x213   :  { %3767 = vtanh.f32 %v1304_v48  ;;  %v990_v15 = vadd.f32 %v4823_v63, %v989_v57  ;;  %v3226_v39 = vpop.f32.mrb[155].mxu0  ;;  %v1587_v10 = vmul.f32 0.5, %v3758_v34 }
 0x214   :  { %v5078_v49 = vadd.f32 0.5, %v1551_v37  ;;  %3769 = vtanh.f32 %v1340_v53  ;;  %v1175_v39 = vadd.f32 %v5088_v13, %v1174_v24 }
 0x215   :  { %v3760_v22 = vpop.eup %3759  ;;  %v1305_v52 = vmul.f32 0.5, %v990_v15  ;;  %v5081_v11 = vadd.f32 0.5, %v1587_v10  ;;  %v3337_v10 = vpop.f32.mrb[41].mxu1 }
 0x216   :  { %v994_v9 = vpop.f32.mrb[156].mxu0  ;;  %v1552_v40 = vmul.f32 0.5, %v3760_v22  ;;  %v3762_v61 = vpop.eup %3761 }
 0x217   :  { %3771 = vtanh.f32 %v1305_v52  ;;  %v995_v63 = vadd.f32 %v5088_v13, %v994_v9  ;;  %v3229_v48 = vpop.f32.mrb[157].mxu0  ;;  %v1588_v57 = vmul.f32 0.5, %v3762_v61  ;;  %v1179_v52 = vpop.f32.mrb[42].mxu1 }
 0x218   :  { %3773 = vtanh.f32 %v1341_v45  ;;  %v5094_v53 = vadd.f32 0.5, %v1552_v40  ;;  %v1180_v48 = vadd.f32 %v5088_v13, %v1179_v52  ;;  %v3340_v61 = vpop.f32.mrb[43].mxu1 }
 0x219   :  { %v3764_v34 = vpop.eup %3763  ;;  %v1306_v37 = vmul.f32 0.5, %v995_v63  ;;  %v5097_v22 = vadd.f32 0.5, %v1588_v57  ;;  %v1342_v63 = vmul.f32 0.5, %v1175_v39  ;;  %v1184_v30 = vpop.f32.mrb[44].mxu1 }
 0x21a   :  { %v1553_v28 = vmul.f32 0.5, %v3764_v34  ;;  %v999_v15 = vpop.f32.mrb[158].mxu0  ;;  %v3766_v55 = vpop.eup %3765 }
 0x21b   :  { %3775 = vtanh.f32 %v1306_v37  ;;  %v1000_v58 = vadd.f32 %v5088_v13, %v999_v15  ;;  %v3232_v26 = vpop.f32.mrb[159].mxu0  ;;  %v1589_v45 = vmul.f32 0.5, %v3766_v55 }
 0x21c   :  { %v5099_v9 = vadd.f32 0.5, %v1553_v28  ;;  %3777 = vtanh.f32 %v1342_v63  ;;  %v1343_v28 = vmul.f32 0.5, %v1180_v48  ;;  %v1185_v63 = vadd.f32 %v5088_v13, %v1184_v30 }
 0x21d   :  { %v3768_v34 = vpop.eup %3767  ;;  %v1307_v24 = vmul.f32 0.5, %v1000_v58  ;;  %v5104_v37 = vadd.f32 0.5, %v1589_v45 }
 0x21e   :  { %v1004_v10 = vpop.f32.mrb[160].mxu0  ;;  %v3770_v26 = vpop.eup %3769  ;;  %v1554_v55 = vmul.f32 0.5, %v3768_v34 }
 0x21f   :  { %3779 = vtanh.f32 %v1307_v24  ;;  %v1005_v57 = vadd.f32 %v5088_v13, %v1004_v10  ;;  %v3235_v15 = vpop.f32.mrb[161].mxu0  ;;  %v1590_v58 = vmul.f32 0.5, %v3770_v26  ;;  %v3343_v24 = vpop.f32.mrb[45].mxu1 }
 0x220   :  { %3781 = vtanh.f32 %v1343_v28  ;;  %v1189_v23 = vpop.f32.mrb[46].mxu1  ;;  %v5113_v39 = vadd.f32 0.5, %v1554_v55  ;;  %v1344_v28 = vmul.f32 0.5, %v1185_v63 }
 0x221   :  { %v3772_v52 = vpop.eup %3771  ;;  %v1308_v61 = vmul.f32 0.5, %v1005_v57  ;;  %v5111_v15 = vadd.f32 0.5, %v1590_v58  ;;  %v1190_v26 = vadd.f32 %v5088_v13, %v1189_v23 }
 0x222   :  { %v3774_v20 = vpop.eup %3773  ;;  %v1555_v41 = vmul.f32 0.5, %v3772_v52  ;;  %v1009_v45 = vpop.f32.mrb[162].mxu0 }
 0x223   :  { %3783 = vtanh.f32 %v1308_v61  ;;  %v1010_v10 = vadd.f32 %v5088_v13, %v1009_v45  ;;  %v3238_v48 = vpop.f32.mrb[163].mxu0  ;;  %v1591_v34 = vmul.f32 0.5, %v3774_v20  ;;  %v3346_v52 = vpop.f32.mrb[47].mxu1  ;;  %v1345_v58 = vmul.f32 0.5, %v1190_v26 }
 0x224   :  { %v5115_v57 = vadd.f32 0.5, %v1555_v41  ;;  %3785 = vtanh.f32 %v1344_v28 }
 0x225   :  { %v3776_v51 = vpop.eup %3775  ;;  %v1309_v43 = vmul.f32 0.5, %v1010_v10  ;;  %v5118_v30 = vadd.f32 0.5, %v1591_v34  ;;  %v1194_v34 = vpop.f32.mrb[48].mxu1 }
 0x226   :  { %v1014_v45 = vpop.f32.mrb[164].mxu0  ;;  %v1556_v20 = vmul.f32 0.5, %v3776_v51  ;;  %v3778_v23 = vpop.eup %3777  ;;  %v1195_v14 = vadd.f32 %v5088_v13, %v1194_v34 }
 0x227   :  { %3787 = vtanh.f32 %v1309_v43  ;;  %v1015_v55 = vadd.f32 %v5088_v13, %v1014_v45  ;;  %v3241_v41 = vpop.f32.mrb[165].mxu0  ;;  %v1592_v48 = vmul.f32 0.5, %v3778_v23  ;;  %v3349_v28 = vpop.f32.mrb[49].mxu1 }
 0x228   :  { %3789 = vtanh.f32 %v1345_v58  ;;  %v5126_v51 = vadd.f32 0.5, %v1556_v20  ;;  %v1199_v63 = vpop.f32.mrb[50].mxu1  ;;  %v1346_v23 = vmul.f32 0.5, %v1195_v14 }
 0x229   :  { %v3780_v24 = vpop.eup %3779  ;;  %v1310_v10 = vmul.f32 0.5, %v1015_v55  ;;  %v5129_v41 = vadd.f32 0.5, %v1592_v48  ;;  %v3352_v2 = vpop.f32.mrb[51].mxu1 }
 0x22a   :  { %v1557_v52 = vmul.f32 0.5, %v3780_v24  ;;  %v1019_v4 = vpop.f32.mrb[166].mxu0  ;;  %v3782_v26 = vpop.eup %3781  ;;  %v1200_v24 = vadd.f32 %v5088_v13, %v1199_v63 }
 0x22b   :  { %3791 = vtanh.f32 %v1310_v10  ;;  %v1020_v43 = vadd.f32 %v5088_v13, %v1019_v4  ;;  %v3244_v45 = vpop.f32.mrb[167].mxu0  ;;  %v1593_v55 = vmul.f32 0.5, %v3782_v26  ;;  %v1204_v61 = vpop.f32.mrb[52].mxu1 }
 0x22c   :  { %v5131_v58 = vadd.f32 0.5, %v1557_v52  ;;  %3793 = vtanh.f32 %v1346_v23  ;;  %v1347_v52 = vmul.f32 0.5, %v1200_v24  ;;  %v1205_v23 = vadd.f32 %v5088_v13, %v1204_v61 }
 0x22d   :  { %v3784_v38 = vpop.eup %3783  ;;  %v1311_v34 = vmul.f32 0.5, %v1020_v43  ;;  %v5136_v10 = vadd.f32 0.5, %v1593_v55 }
 0x22e   :  { %v1024_v28 = vpop.f32.mrb[168].mxu0  ;;  %v3786_v45 = vpop.eup %3785  ;;  %v1558_v26 = vmul.f32 0.5, %v3784_v38 }
 0x22f   :  { %3795 = vtanh.f32 %v1311_v34  ;;  %v1025_v4 = vadd.f32 %v5088_v13, %v1024_v28  ;;  %v3247_v48 = vpop.f32.mrb[169].mxu0  ;;  %v1594_v43 = vmul.f32 0.5, %v3786_v45  ;;  %v3355_v34 = vpop.f32.mrb[53].mxu1 }
 0x230   :  { %3797 = vtanh.f32 %v1347_v52  ;;  %v1209_v12 = vpop.f32.mrb[54].mxu1  ;;  %v1683_v14 = vadd.f32 0.5, %v1558_v26 }
 0x231   :  { %v3788_v2 = vpop.eup %3787  ;;  %v1312_v63 = vmul.f32 0.5, %v1025_v4  ;;  %v5143_v48 = vadd.f32 0.5, %v1594_v43  ;;  %v1348_v4 = vmul.f32 0.5, %v1205_v23  ;;  %v1210_v52 = vadd.f32 %v5088_v13, %v1209_v12  ;;  %v3358_v45 = vpop.f32.mrb[55].mxu1 }
 0x232   :  { %v3790_v20 = vpop.eup %3789  ;;  %v1559_v40 = vmul.f32 0.5, %v3788_v2  ;;  %v1029_v55 = vpop.f32.mrb[170].mxu0 }
 0x233   :  { %3799 = vtanh.f32 %v1312_v63  ;;  %v1030_v28 = vadd.f32 %v5088_v13, %v1029_v55  ;;  %v3250_v24 = vpop.f32.mrb[171].mxu0  ;;  %v1595_v38 = vmul.f32 0.5, %v3790_v20  ;;  %v1349_v63 = vmul.f32 0.5, %v1210_v52 }
 0x234   :  { %v1684_v62 = vadd.f32 0.5, %v1559_v40  ;;  %3801 = vtanh.f32 %v1348_v4 }
 0x235   :  { %v3792_v27 = vpop.eup %3791  ;;  %v1313_v2 = vmul.f32 0.5, %v1030_v28  ;;  %v5146_v5 = vadd.f32 0.5, %v1595_v38 }
 0x236   :  { %v3468_v61 = vpack.c.bf16 %v1684_v62, %v1683_v14  ;;  %v1034_v34 = vpop.f32.mrb[172].mxu0  ;;  %v1560_v55 = vmul.f32 0.5, %v3792_v27  ;;  %v3794_v26 = vpop.eup %3793 }
 0x237   :  { %3803 = vtanh.f32 %v1313_v2  ;;  %v1035_v43 = vadd.f32 %v5088_v13, %v1034_v34  ;;  %v3253_v20 = vpop.f32.mrb[173].mxu0  ;;  %v1596_v27 = vmul.f32 0.5, %v3794_v26  ;;  %v1214_v62 = vpop.f32.mrb[56].mxu1 }
 0x238   :  { %3470 = vmatprep.subr.msk.bf16.mxu1 %vm4634_vm4, %v3468_v61  ;;  %3805 = vtanh.f32 %v1349_v63  ;;  %v1215_v24 = vadd.f32 %v5088_v13, %v1214_v62  ;;  %v3361_v38 = vpop.f32.mrb[57].mxu1  ;;  %v1685_v52 = vadd.f32 0.5, %v1560_v55 }
 0x239   :  { %v3796_v12 = vpop.eup %3795  ;;  %v1314_v23 = vmul.f32 0.5, %v1035_v43  ;;  %3473 = vmatpush3.bf16.xpose.msk.msra.mxu1 %vm4634_vm4, %v3471_v47  ;;  %v5160_v61 = vadd.f32 0.5, %v1596_v27  ;;  %v1219_v34 = vpop.f32.mrb[58].mxu1 }
 0x23a   :  { %v1561_v14 = vmul.f32 0.5, %v3796_v12  ;;  %v1039_v28 = vpop.f32.mrb[174].mxu0  ;;  %v3798_v4 = vpop.eup %3797  ;;  %v1350_v63 = vmul.f32 0.5, %v1215_v24  ;;  %v1220_v47 = vadd.f32 %v5088_v13, %v1219_v34 }
 0x23b   :  { %3807 = vtanh.f32 %v1314_v23  ;;  %v1040_v45 = vadd.f32 %v5088_v13, %v1039_v28  ;;  %v3256_v2 = vpop.f32.mrb[175].mxu0  ;;  %v1597_v8 = vmul.f32 0.5, %v3798_v4  ;;  %v3364_v43 = vpop.f32.mrb[59].mxu1 }
 0x23c   :  { %v1686_v16 = vadd.f32 0.5, %v1561_v14  ;;  %3809 = vtanh.f32 %v1350_v63  ;;  %v1351_v27 = vmul.f32 0.5, %v1220_v47  ;;  %v5175_v34 = vpop.f32.mrb[60].mxu1 }
 0x23d   :  { %v3800_v20 = vpop.eup %3799  ;;  %v1315_v26 = vmul.f32 0.5, %v1040_v45  ;;  %v5163_v38 = vadd.f32 0.5, %v1597_v8  ;;  %v3367_v47 = vpop.f32.mrb[61].mxu1 }
 0x23e   :  { %v3474_v12 = vpack.c.bf16 %v1686_v16, %v1685_v52  ;;  %v1044_v62 = vpop.f32.mrb[176].mxu0  ;;  %v3802_v28 = vpop.eup %3801  ;;  %v1562_v2 = vmul.f32 0.5, %v3800_v20  ;;  %v5378_v52 = vpack.c.bf16 %v5026_v19, %v5023_v44 }
 0x23f   :  { %3811 = vtanh.f32 %v1315_v26  ;;  %v1045_v55 = vadd.f32 %v5088_v13, %v1044_v62  ;;  %v3259_v23 = vpop.f32.mrb[177].mxu0  ;;  %v1598_v45 = vmul.f32 0.5, %v3802_v28 }
 0x240   :  { %3476 = vmatprep.subr.msk.bf16.mxu1 %vm4634_vm4, %v3474_v12  ;;  %3813 = vtanh.f32 %v1351_v27  ;;  %v1687_v62 = vadd.f32 0.5, %v1562_v2 }
 0x241   :  { %v3804_v24 = vpop.eup %3803  ;;  %v1316_v4 = vmul.f32 0.5, %v1045_v55  ;;  %3479 = vmatpush3.bf16.xpose.msk.msra.mxu1 %vm4634_vm4, %v5378_v52  ;;  %v5178_v26 = vadd.f32 0.5, %v1598_v45 }
 0x242   :  { %v3806_v16 = vpop.eup %3805  ;;  %v1563_v8 = vmul.f32 0.5, %v3804_v24  ;;  %v1049_v63 = vpop.f32.mrb[178].mxu0 }
 0x243   :  { %3815 = vtanh.f32 %v1316_v4  ;;  %v1050_v43 = vadd.f32 %v5088_v13, %v1049_v63  ;;  %v3262_v20 = vpop.f32.mrb[179].mxu0  ;;  %v1599_v12 = vmul.f32 0.5, %v3806_v16  ;;  %v5379_v16 = vpack.c.bf16 %v5046_v18, %v5044_v3 }
 0x244   :  { %v1688_v44 = vadd.f32 0.5, %v1563_v8 }
 0x245   :  { %v3808_v19 = vpop.eup %3807  ;;  %v1317_v55 = vmul.f32 0.5, %v1050_v43  ;;  %v5180_v23 = vadd.f32 0.5, %v1599_v12  ;;  %v5195_v43 = vstv %s5370_s4  ;;  %s3876_s4 = smov [#allocation3]  }
 0x246   :  { %v3480_v27 = vpack.c.bf16 %v1688_v44, %v1687_v62  ;;  %v1054_v28 = vpop.f32.mrb[180].mxu0  ;;  %v1564_v52 = vmul.f32 0.5, %v3808_v19  ;;  %v3810_v63 = vpop.eup %3809  ;;  %s2495_s21 = sshll.u32 %s3876_s4, 4  ;;  %s2496_s21 = int_to_ptr.vmem [resolvable:$true] %s2495_s21 }
 0x247   :  { %3817 = vtanh.f32 %v1317_v55  ;;  %v1055_v24 = vadd.f32 %v5088_v13, %v1054_v28  ;;  %v3265_v47 = vpop.f32.mrb[181].mxu0  ;;  %v1600_v8 = vmul.f32 0.5, %v3810_v63  ;;  %s3848_s1 = scalar_lea.vmem %s2496_s21, 128  ;;  %p3853_p1 = scmp.lt.s32.totalorder %s2496_s21, %s2496_s21 }
 0x248   :  { %3482 = vmatprep.subr.msk.bf16.mxu1 %vm4634_vm4, %v3480_v27  ;;  %v1689_v44 = vadd.f32 0.5, %v1564_v52  ;;  %p3849_p0 = scmp.ne.s32.totalorder %s2496_s21, %s3848_s1  ;;  %p3854_p2 = scmp.lt.s32.totalorder %s3848_s1, %s3848_s1 }
 0x249   :  { %v3812_v2 = vpop.eup %3811  ;;  %v1318_v45 = vmul.f32 0.5, %v1055_v24  ;;  %3485 = vmatpush3.bf16.xpose.msk.msra.mxu1 %vm4634_vm4, %v5379_v16  ;;  %v5198_v3 = vadd.f32 0.5, %v1600_v8 }
 0x24a   :  { %v1565_v20 = vmul.f32 0.5, %v3812_v2  ;;  %v1059_v12 = vpop.f32.mrb[182].mxu0  ;;  %v3814_v62 = vpop.eup %3813  ;;  %p3855_p3 = por %p3854_p2, %p3853_p1 }
 0x24b   :  { %3819 = vtanh.f32 %v1318_v45  ;;  %v1060_v19 = vadd.f32 %v5088_v13, %v1059_v12  ;;  %v3268_v55 = vpop.f32.mrb[183].mxu0  ;;  %v2176_v27 = vpop.f32.mrb[62].mxu1  ;;  %v1601_v18 = vmul.f32 0.5, %v3814_v62 }
 0x24c   :  { %v1690_v28 = vadd.f32 0.5, %v1565_v20  ;;  %v2177_v24 = vadd.f32 %v2176_v27, %v5195_v43  ;;  %v2178_v47 = vpop.f32.mrb[63].mxu1  ;;  %p3856_p4 = pnand %p3855_p3, %p3849_p0 }
 0x24d   :  { %v3816_v63 = vpop.eup %3815  ;;  %v1319_v16 = vmul.f32 0.5, %v1060_v19  ;;  %v2179_v4 = vadd.f32 %v2178_v47, %v5195_v43  ;;  %v5202_v40 = vadd.f32 0.5, %v1601_v18 }
 0x24e   :  { %v3486_v2 = vpack.c.bf16 %v1690_v28, %v1689_v44  ;;  %v1064_v14 = vpop.f32.mrb[184].mxu0  ;;  %v2394_v52 = vmul.f32 0.5, %v2177_v24  ;;  %v1566_v8 = vmul.f32 0.5, %v3816_v63  ;;  %v5380_v44 = vpack.c.bf16 %v5062_v60, %v5057_v1 }
 0x24f   :  { %3821 = vtanh.f32 %v1319_v16  ;;  %v1065_v45 = vadd.f32 %v5088_v13, %v1064_v14  ;;  %v3271_v12 = vpop.f32.mrb[185].mxu0  ;;  %v2395_v20 = vmul.f32 0.5, %v2179_v4  ;;  %v3569_v62 = vpack.c.bf16 %v5202_v40, %v5198_v3 }
 0x250   :  { %3488 = vmatprep.subr.msk.bf16.mxu1 %vm4634_vm4, %v3486_v2  ;;  %3823 = vtanh.f32 %v2394_v52  ;;  %v1691_v18 = vadd.f32 0.5, %v1566_v8  ;;  %v5381_v60 = vpack.c.bf16 %v5078_v49, %v5076_v56 }
 0x251   :  { %v3818_v19 = vpop.eup %3817  ;;  %v1320_v55 = vmul.f32 0.5, %v1065_v45  ;;  %3491 = vmatpush3.bf16.xpose.msk.msra.mxu1 %vm4634_vm4, %v5380_v44  ;;  %3825 = vtanh.f32 %v2395_v20 }
 0x252   :  { %v1567_v14 = vmul.f32 0.5, %v3818_v19  ;;  %v1069_v27 = vpop.f32.mrb[186].mxu0 }
 0x253   :  { %3827 = vtanh.f32 %v1320_v55  ;;  %v1070_v4 = vadd.f32 %v5088_v13, %v1069_v27  ;;  %v3274_v28 = vpop.f32.mrb[187].mxu0 }
 0x254   :  { %v1692_v24 = vadd.f32 0.5, %v1567_v14 }
 0x255   :  { %v3820_v47 = vpop.eup %3819  ;;  %v1321_v63 = vmul.f32 0.5, %v1070_v4 }
 0x256   :  { %v3492_v16 = vpack.c.bf16 %v1692_v24, %v1691_v18  ;;  %v1568_v2 = vmul.f32 0.5, %v3820_v47  ;;  %v5382_v18 = vpack.c.bf16 %v5099_v9, %v5094_v53  ;;  %v5385_v53 = vpack.c.bf16 %v5131_v58, %v5126_v51 }
 0x257   :  { %3829 = vtanh.f32 %v1321_v63  ;;  %v5386_v9 = vmov 0.0|0.0   ;;  %v2441_v51 = vlaneseq }
 0x258   :  { %3494 = vmatprep.subr.msk.bf16.mxu1 %vm4634_vm4, %v3492_v16  ;;  %v1693_v8 = vadd.f32 0.5, %v1568_v2  ;;  %v5383_v2 = vpack.c.bf16 %v5115_v57, %v5113_v39  ;;  %v5387_v39 = vpack.c.bf16 %v4979_v0, %v4976_v21  ;;  %v5390_v57 = vpack.c.bf16 %v5020_v7, %v5016_v50 }
 0x259   :  { %v3822_v1 = vpop.eup %3821  ;;  %3497 = vmatpush3.bf16.xpose.msk.msra.mxu1 %vm4634_vm4, %v5381_v60  ;;  %v5391_v21 = vpack.c.bf16 %v5035_v25, %v5030_v31  ;;  %v5392_v0 = vpack.c.bf16 %v5049_v17, %v5042_v59  ;;  %v5395_v50 = vpack.c.bf16 %v5104_v37, %v5097_v22  ;;  %v5396_v7 = vpack.c.bf16 %v5118_v30, %v5111_v15 }
 0x25a   :  { %v3824_v52 = vpop.eup %3823  ;;  %v1569_v45 = vmul.f32 0.5, %v3822_v1  ;;  %v5384_v1 = vpack.c.bf16 %v4962_v33, %v4959_v29  ;;  %v5388_v29 = vmov 0.0   ;;  %v5389_v33 = vpack.c.bf16 %v4997_v35, %v4993_v36 }
 0x25b   :  { %v3826_v12 = vpop.eup %3825  ;;  %v2410_v20 = vmul.f32 0.5, %v3824_v52  ;;  %v5393_v36 = vpack.c.bf16 %v5067_v32, %v5060_v46  ;;  %v5394_v35 = vpack.c.bf16 %v5081_v11, %v5074_v42  ;;  %v5397_v31 = vpack.c.bf16 %v5136_v10, %v5129_v41 }
 0x25c   :  { %v1694_v19 = vadd.f32 0.5, %v1569_v45  ;;  %v2411_v55 = vmul.f32 0.5, %v3826_v12  ;;  %v5398_v25 = vpack.c.bf16 %v5146_v5, %v5143_v48  ;;  %v1225_v42 = vadd.f32 %v5088_v13, %v5175_v34 }
 0x25d   :  { %v3828_v44 = vpop.eup %3827  ;;  %v5222_v14 = vadd.f32 0.5, %v2410_v20  ;;  %v5399_v5 = vpack.c.bf16 %v5163_v38, %v5160_v61  ;;  %v3875_v15 = vmov 1966171168   ;;  %v2442_v58 = vshrl.u32 %v2441_v51, 7 }
 0x25e   :  { %v3498_v27 = vpack.c.bf16 %v1694_v19, %v1693_v8  ;;  %v5224_v4 = vadd.f32 0.5, %v2411_v55  ;;  %v1570_v28 = vmul.f32 0.5, %v3828_v44  ;;  %v1352_v37 = vmul.f32 0.5, %v1225_v42 }
 0x25f   :  { %v2439_v30 = vunpack.c.l.s4 %v3875_v15  ;;  %v5400_v13 = vpack.c.bf16 %v5180_v23, %v5178_v26  ;;  %vm2486_vm5 = vcmp.lt.s32.totalorder %v2441_v51, 1000 }
 0x260   :  { %3500 = vmatprep.subr.msk.bf16.mxu1 %vm4634_vm4, %v3498_v27  ;;  %v2434_v56 = vcombine.low %v5222_v14, %v5224_v4  ;;  %v1695_v47 = vadd.f32 0.5, %v1570_v28 }
 0x261   :  { %v3830_v49 = vpop.eup %3829  ;;  %3503 = vmatpush3.bf16.xpose.msk.msra.mxu1 %vm4634_vm4, %v5382_v18  ;;  %v2440_v41 = vunpack.c.0.s8 %v2439_v30 }
 0x262   :  { %v1571_v24 = vmul.f32 0.5, %v3830_v49 }
 0x263   :  { %v2443_v34 = vsub.s32 %v2440_v41, %v2442_v58 }
 0x264   :  { %v1696_v63 = vadd.f32 0.5, %v1571_v24 }
 0x265   :  { %v2444_v20 = vrot.slane %v2434_v56, %v2443_v34 }
 0x266   :  { %v3504_v16 = vpack.c.bf16 %v1696_v63, %v1695_v47 }
 0x268   :  { %3506 = vmatprep.subr.msk.bf16.mxu1 %vm4634_vm4, %v3504_v16 }
 0x269   :  { %3509 = vmatpush3.bf16.xpose.msk.msra.mxu1 %vm4634_vm4, %v5383_v2 }
 0x26a   :  { %3512 = vmatprep.subr.msk.bf16.mxu1 %vm4634_vm4, %v5384_v1 }
 0x271   :  { %3515 = vmatpush3.bf16.xpose.msk.msra.mxu1 %vm4634_vm4, %v5385_v53 }
 0x272   :  { %3516 = vmatprep.subr.bf16.mxu1 %v5386_v9 }
 0x278   :  { %2988 = vmatmul.mubr.msk.f32.vlgmr.msra.gmra.mrb[66].mxu1 %vm1731_vm3, %v5012_v6 }
 0x279   :  { %3519 = vmatpush1.bf16.xpose.msk.msra.mxu1 %vm4634_vm4, %v5387_v39  ;;  %2387 = vmatprep.mubr.f32.mxu1 %v5388_v29 }
 0x27a   :  { %3520 = vmatprep.subr.bf16.mxu1 %v5386_v9 }
 0x281   :  { %3523 = vmatpush1.bf16.xpose.msk.msra.mxu1 %vm4634_vm4, %v5389_v33 }
 0x282   :  { %3524 = vmatprep.subr.bf16.mxu1 %v5386_v9 }
 0x289   :  { %3527 = vmatpush1.bf16.xpose.msk.msra.mxu1 %vm4634_vm4, %v5390_v57 }
 0x28a   :  { %3528 = vmatprep.subr.bf16.mxu1 %v5386_v9 }
 0x291   :  { %3531 = vmatpush1.bf16.xpose.msk.msra.mxu1 %vm4634_vm4, %v5391_v21 }
 0x292   :  { %3532 = vmatprep.subr.bf16.mxu1 %v5386_v9 }
 0x299   :  { %3535 = vmatpush1.bf16.xpose.msk.msra.mxu1 %vm4634_vm4, %v5392_v0 }
 0x29a   :  { %3536 = vmatprep.subr.bf16.mxu1 %v5386_v9 }
 0x2a1   :  { %3539 = vmatpush1.bf16.xpose.msk.msra.mxu1 %vm4634_vm4, %v5393_v36 }
 0x2a2   :  { %3540 = vmatprep.subr.bf16.mxu1 %v5386_v9 }
 0x2a9   :  { %3543 = vmatpush1.bf16.xpose.msk.msra.mxu1 %vm4634_vm4, %v5394_v35 }
 0x2aa   :  { %3544 = vmatprep.subr.bf16.mxu1 %v5386_v9 }
 0x2b1   :  { %3547 = vmatpush1.bf16.xpose.msk.msra.mxu1 %vm4634_vm4, %v5395_v50 }
 0x2b2   :  { %3548 = vmatprep.subr.bf16.mxu1 %v5386_v9 }
 0x2b9   :  { %3551 = vmatpush1.bf16.xpose.msk.msra.mxu1 %vm4634_vm4, %v5396_v7 }
 0x2ba   :  { %3552 = vmatprep.subr.bf16.mxu1 %v5386_v9 }
 0x2c1   :  { %3555 = vmatpush1.bf16.xpose.msk.msra.mxu1 %vm4634_vm4, %v5397_v31 }
 0x2c2   :  { %3556 = vmatprep.subr.bf16.mxu1 %v5386_v9 }
 0x2c9   :  { %3559 = vmatpush1.bf16.xpose.msk.msra.mxu1 %vm4634_vm4, %v5398_v25 }
 0x2ca   :  { %3560 = vmatprep.subr.bf16.mxu1 %v5386_v9 }
 0x2cb   :  { %v2247_v59 = vpop.f32.mrb[64].mxu1 }
 0x2cc   :  { %v2248_v17 = vadd.f32 %v2247_v59, %v5195_v43  ;;  %v2249_v46 = vpop.f32.mrb[65].mxu1 }
 0x2cd   :  { %v2250_v32 = vadd.f32 %v2249_v46, %v5195_v43 }
 0x2ce   :  { %v2396_v11 = vmul.f32 0.5, %v2248_v17 }
 0x2cf   :  { %v2397_v22 = vmul.f32 0.5, %v2250_v32 }
 0x2d0   :  { %3831 = vtanh.f32 %v2396_v11 }
 0x2d1   :  { %3833 = vtanh.f32 %v2397_v22  ;;  %3563 = vmatpush1.bf16.xpose.msk.msra.mxu1 %vm4634_vm4, %v5399_v5 }
 0x2d2   :  { %3564 = vmatprep.subr.bf16.mxu1 %v5386_v9  ;;  %3835 = vtanh.f32 %v1352_v37 }
 0x2d9   :  { %3567 = vmatpush1.bf16.xpose.msk.msra.mxu1 %vm4634_vm4, %v5400_v13 }
 0x2da   :  { %v3832_v10 = vpop.eup %3831  ;;  %3568 = vmatprep.subr.bf16.mxu1 %v5386_v9 }
 0x2db   :  { %v3834_v48 = vpop.eup %3833  ;;  %v2412_v61 = vmul.f32 0.5, %v3832_v10 }
 0x2dc   :  { %v2413_v38 = vmul.f32 0.5, %v3834_v48  ;;  %v3836_v45 = vpop.eup %3835 }
 0x2dd   :  { %v2420_v60 = vadd.f32 0.5, %v2412_v61  ;;  %v1602_v23 = vmul.f32 0.5, %v3836_v45 }
 0x2de   :  { %v2421_v52 = vadd.f32 0.5, %v2413_v38 }
 0x2df   :  { %v1727_v19 = vadd.f32 0.5, %v1602_v23 }
 0x2e0   :  { %v2435_v12 = vcombine.low %v2420_v60, %v2421_v52 }
 0x2e1   :  { %3571 = vmatpush1.bf16.xpose.msk.msra.mxu1 %vm4634_vm4, %v3569_v62 }
 0x2e2   :  { %2379 = vmatprep.subr.mxu1 %v5388_v29  ;;  %v2451_v26 = vrot.slane %v2435_v12, %v2443_v34 }
 0x2e4   :  { %v2466_v8 = vcombine.low %v2444_v20, %v2451_v26 }
 0x2e6   :  { %v2474_v35 = vrot.slane %v2466_v8, %v2443_v34 }
 0x2e9   :  { %2758 = vmatpush1.xpose.msk.msra.mxu1 %vm1731_vm3, %v1727_v19 }
 0x2ec   :  { %2759 = vmatmul.mubr.msk.f32.vlgmr.msra.gmra.mrb[68].mxu1 %vm1731_vm3, %v5012_v6 }
 0x34b   :  { %v2318_v55 = vpop.f32.mrb[66].mxu1 }
 0x34c   :  { %v2319_v44 = vadd.f32 %v2318_v55, %v5195_v43  ;;  %v2320_v14 = vpop.f32.mrb[67].mxu1 }
 0x34d   :  { %v2321_v40 = vadd.f32 %v2320_v14, %v5195_v43 }
 0x34e   :  { %v2398_v3 = vmul.f32 0.5, %v2319_v44 }
 0x34f   :  { %v2399_v54 = vmul.f32 0.5, %v2321_v40 }
 0x350   :  { %3837 = vtanh.f32 %v2398_v3 }
 0x351   :  { %3839 = vtanh.f32 %v2399_v54 }
 0x35a   :  { %v3838_v62 = vpop.eup %3837 }
 0x35b   :  { %v3840_v27 = vpop.eup %3839  ;;  %v2414_v4 = vmul.f32 0.5, %v3838_v62 }
 0x35c   :  { %v2415_v28 = vmul.f32 0.5, %v3840_v27 }
 0x35d   :  { %v2422_v56 = vadd.f32 0.5, %v2414_v4 }
 0x35e   :  { %v2423_v49 = vadd.f32 0.5, %v2415_v28 }
 0x360   :  { %v2436_v18 = vcombine.low %v2422_v56, %v2423_v49 }
 0x362   :  { %v2458_v21 = vrot.slane %v2436_v18, %v2443_v34 }
 0x3bf   :  { %v2389_v24 = vpop.f32.mrb[68].mxu1 }
 0x3c0   :  { %v2390_v6 = vadd.f32 %v2389_v24, %v5195_v43  ;;  %v2391_v47 = vpop.f32.mrb[69].mxu1 }
 0x3c1   :  { %v2392_v63 = vadd.f32 %v2391_v47, %v5195_v43 }
 0x3c2   :  { %v2400_v16 = vmul.f32 0.5, %v2390_v6 }
 0x3c3   :  { %v2401_v2 = vmul.f32 0.5, %v2392_v63 }
 0x3c4   :  { %3841 = vtanh.f32 %v2400_v16 }
 0x3c5   :  { %3843 = vtanh.f32 %v2401_v2 }
 0x3ce   :  { %v3842_v1 = vpop.eup %3841 }
 0x3cf   :  { %v3844_v53 = vpop.eup %3843  ;;  %v2416_v9 = vmul.f32 0.5, %v3842_v1 }
 0x3d0   :  { %v2417_v39 = vmul.f32 0.5, %v3844_v53 }
 0x3d1   :  { %v2424_v29 = vadd.f32 0.5, %v2416_v9 }
 0x3d2   :  { %v2425_v33 = vadd.f32 0.5, %v2417_v39 }
 0x3d4   :  { %v2437_v57 = vcombine.low %v2424_v29, %v2425_v33 }
 0x3d6   :  { %v2465_v0 = vrot.slane %v2437_v57, %v2443_v34 }
 0x3d8   :  { %v2467_v36 = vcombine.low %v2458_v21, %v2465_v0 }
 0x3da   :  { %v2481_v50 = vrot.slane %v2467_v36, %v2443_v34 }
 0x3dc   :  { %v2482_v43 = vcombine.low %v2474_v35, %v2481_v50 }
 0x3de   :  { %2488 = vst.msk [vmem:[#allocation3] sm:$0xff] %vm2486_vm5, %v2482_v43 }
 0x3df   :  { %3859 = shalt.err (!%p3856_p4)
}
 0x3e0   :  { %s3860_s24 = scalar_lea.hbm %s5371_s5, 128 }
 0x3e1   :  { %p3861_p5 = scmp.ne.s32.totalorder %s5371_s5, %s3860_s24  ;;  %p3864_p6 = scmp.lt.u32.totalorder %s3860_s24, %s5371_s5 }
 0x3e3   :  { %p3866_p7 = pnand %p3864_p6, %p3861_p5 }
 0x3e5   :  { %3869 = shalt.err (!%p3866_p7)
}
 0x3e6   :  { %2498 = dma.vmem_to_hbm [thread:$0]  %s2496_s21, 128, %s5371_s5, [#allocation4]  }
 0x3e7   :  { %3870 = dma.done.wait [#allocation4], 128  }
 0x3e8   :  { %3871 = vsyncadd [#allocation4], 4294967168 }
 0x3e9   :  { %2502 = vsyncpa [#allocation4], 1 }

</bundles_post_ra>
